<compile_context>
chip_gen: v7x
topology: tpu7x:2x2x1
jax: 0.10.0
libtpu: 0.0.40
codegen_flags: <defaults>
</compile_context>

<pallas_src>
from functools import partial

import jax
import jax.numpy as jnp
from jax import lax
from jax.experimental import pallas as pl
from jax.experimental.pallas import tpu as pltpu


# ----------------------------------------------------------------------------
# Utilities (plain JAX glue)
# ----------------------------------------------------------------------------
def make_coordinate_grid_2d(shape):
    """[-1,1] x [-1,1] meshgrid of given (h, w); returns (h, w, 2), [...,0]=x, [...,1]=y."""
    h, w = shape
    x = jnp.arange(w, dtype=jnp.float32)
    y = jnp.arange(h, dtype=jnp.float32)
    x = 2.0 * (x / (w - 1)) - 1.0
    y = 2.0 * (y / (h - 1)) - 1.0
    xx = jnp.tile(x[None, :], (h, 1))
    yy = jnp.tile(y[:, None], (1, w))
    return jnp.stack([xx, yy], axis=2)


def _reflect(coord, span):
    """PyTorch grid_sample reflection padding (align_corners=True), span = size-1."""
    # TODO(synk): matches torch for the near-identity warps used here; can
    # deviate from torch's reflection for coordinates far outside [-1, 1].
    a = jnp.abs(coord)
    extra = jnp.mod(a, span)
    flips = jnp.floor(a / span)
    even = jnp.mod(flips, 2.0) == 0.0
    return jnp.where(even, extra, span - extra)


def warp_coordinates_jax(coords, theta, control_points, control_params):
    """Transform.warp_coordinates: coords (B or 1, N, 2) -> (B, N, 2)."""
    B = theta.shape[0]
    coords = jnp.broadcast_to(coords, (B,) + coords.shape[1:])
    transformed = (jnp.einsum("bij,bnj->bni", theta[:, :, :2], coords)
                   + theta[:, None, :, 2])
    distances = jnp.abs(coords[:, :, None, :]
                        - control_points[None, None, :, :]).sum(-1)        # (B, N, P)
    result = distances ** 2 * jnp.log(distances + 1e-6)
    result = (result * control_params).sum(axis=2)[..., None]              # (B, N, 1)
    return transformed + result   # same scalar TPS offset added to x and y (as in torch)


# ----------------------------------------------------------------------------
# Kernel: warp the coordinate grid (affine + TPS), then bilinear-sample the
# frame with reflection padding via a SEPARABLE one-hot factorization:
#   out[c, n] = sum_h Sy[h, n] * ( sum_w img[c, h, w] * Sx[w, n] )
# Stage 1 (contraction over W) runs on the MXU, stage 2 on the VPU.
# Grid = (batch, output-pixel tile).
# ----------------------------------------------------------------------------
def _transform_frame_kernel(img_ref, theta_ref, gx_ref, gy_ref, cp_ref, cw_ref,
                            out_ref, *, C, H, W):
    b = pl.program_id(0)

    gx = gx_ref[0, :]                 # (TN,) normalized x of this output tile
    gy = gy_ref[0, :]                 # (TN,) normalized y

    # --- affine part: theta_ref is (B, 6) in SMEM = [a00,a01,tx, a10,a11,ty]
    a00 = theta_ref[b, 0]; a01 = theta_ref[b, 1]; a02 = theta_ref[b, 2]
    a10 = theta_ref[b, 3]; a11 = theta_ref[b, 4]; a12 = theta_ref[b, 5]
    wx = gx * a00 + gy * a01 + a02
    wy = gx * a10 + gy * a11 + a12

    # --- TPS part: distances as (P, TN) keeps the pixel axis lane-dense
    cpx = cp_ref[0, :]                # (P,)
    cpy = cp_ref[1, :]
    cw = cw_ref[0, 0, :]              # (P,)
    d = (jnp.abs(cpx[:, None] - gx[None, :])
         + jnp.abs(cpy[:, None] - gy[None, :]))               # (P, TN), L1 distance
    r = d * d * jnp.log(d + 1e-6)
    tps = jnp.sum(r * cw[:, None], axis=0)                    # (TN,)
    wx = wx + tps                                             # same offset on both
    wy = wy + tps                                             # coords, as in torch

    # --- grid_sample: unnormalize (align_corners=True), reflect, clip, bilinear
    ix = (wx + 1.0) * 0.5 * (W - 1)
    iy = (wy + 1.0) * 0.5 * (H - 1)
    ix = jnp.clip(_reflect(ix, float(W - 1)), 0.0, float(W - 1))
    iy = jnp.clip(_reflect(iy, float(H - 1)), 0.0, float(H - 1))

    ix0f = jnp.floor(ix); iy0f = jnp.floor(iy)
    fx = ix - ix0f; fy = iy - iy0f
    ix0 = jnp.clip(ix0f.astype(jnp.int32), 0, W - 1)
    iy0 = jnp.clip(iy0f.astype(jnp.int32), 0, H - 1)
    ix1 = jnp.clip(ix0 + 1, 0, W - 1)
    iy1 = jnp.clip(iy0 + 1, 0, H - 1)

    # --- separable sampling matrices, built in f32 (2 cmp + 2 sel + 1 add each).
    # Duplicate corners at borders (ix0 == ix1) sum additively (weight -> 1),
    # exactly as the dense bilinear formula requires.
    col = lax.broadcasted_iota(jnp.int32, (W, 1), 0)           # (W, 1)
    row = lax.broadcasted_iota(jnp.int32, (H, 1), 0)           # (H, 1)
    sx = (jnp.where(col == ix0[None, :], (1.0 - fx)[None, :], 0.0)
          + jnp.where(col == ix1[None, :], fx[None, :], 0.0))  # (W, TN) f32
    sy = (jnp.where(row == iy0[None, :], (1.0 - fy)[None, :], 0.0)
          + jnp.where(row == iy1[None, :], fy[None, :], 0.0))  # (H, TN) f32
    sx_bf = sx.astype(jnp.bfloat16)   # single cast feeding the MXU

    # --- stage 1 (MXU, per channel): (H, W) bf16 @ (W, TN) bf16 -> (H, TN) f32
    # --- stage 2 (VPU): weight rows by Sy and reduce over H -> (TN,)
    outs = []
    for c in range(C):                # static C, unrolled at trace time
        u_c = jnp.dot(img_ref[0, c], sx_bf, preferred_element_type=jnp.float32)
        outs.append(jnp.sum(u_c * sy, axis=0))
    out = jnp.stack(outs, axis=0)     # (C, TN)
    out_ref[0] = out.astype(out_ref.dtype)


# ----------------------------------------------------------------------------
# Tiling / VMEM bookkeeping (single footprint formula used by both the tile
# picker and the explicit vmem limit).
# ----------------------------------------------------------------------------
def _tile_vmem_bytes(tn, C, H, W, P):
    """Conservative per-tile live-intermediate footprint inside the kernel."""
    sample_mats = tn * (4 * W + 2 * W + 4 * H)      # sx f32 + sx bf16 + sy f32
    matmul_live = tn * H * 4 * 2                     # u_c and u_c * sy
    tps_tmp = 3 * P * tn * 4                         # d, r, r*cw
    vectors = 24 * tn * 4                            # coord / weight 1-D temps
    out_acc = C * tn * 4
    return sample_mats + matmul_live + tps_tmp + vectors + out_acc


def _pick_tile_n(n_pix, C, H, W, P, budget=24 * 1024 * 1024):
    """Largest lane-dense output tile (multiple of 128 dividing n_pix, or n_pix
    itself) whose in-kernel working set fits a v7x-safe budget."""
    if n_pix % 128 != 0:
        return n_pix                       # toy / odd sizes: single full tile
    for cand in (1024, 512, 256, 128):
        if n_pix % cand == 0 and _tile_vmem_bytes(cand, C, H, W, P) <= budget:
            return cand
    # With the separable factorization even TN=128 fits the budget for any
    # realistic H, W; this is a last resort, not a silent budget violation.
    return 128


def transform_frame_pallas(frame, theta, control_points, control_params):
    """frame: (B,C,H,W) f32; theta: (B,2,3); control_points: (P,2); control_params: (B,1,P)."""
    B, C, H, W = frame.shape
    N = H * W
    P = control_points.shape[0]
    TN = _pick_tile_n(N, C, H, W, P)
    n_tiles = N // TN

    base = make_coordinate_grid_2d((H, W)).reshape(N, 2)       # (N, 2) [:,0]=x, [:,1]=y
    gx_full = base[:, 0].reshape(1, N)
    gy_full = base[:, 1].reshape(1, N)
    cp2 = control_points.T.astype(jnp.float32)                 # (2, P)
    theta_flat = theta.reshape(B, 6).astype(jnp.float32)
    cw3 = control_params.reshape(B, 1, P).astype(jnp.float32)
    img_bf = frame.astype(jnp.bfloat16)                        # (B, C, H, W) bf16 into MXU

    # Explicit VMEM limit from the same footprint formula + pipeline buffers.
    # Capped at 48 MiB: safe on every generation (v5e/v6e 128 MiB, v7x 64 MiB)
    # and leaves headroom for Mosaic scratch / double-buffering.
    tile_bytes = _tile_vmem_bytes(TN, C, H, W, P)
    pipe_bytes = 2 * (C * H * W * 2) + 2 * (C * TN * 4) + 4 * (TN * 4) + 4096
    vmem_limit = int(min(48 * 1024 * 1024,
                         max(32 * 1024 * 1024, 2 * (tile_bytes + pipe_bytes))))

    # Advisory cost estimate so XLA schedules surrounding ops sensibly.
    flops = int(B * (2 * C * H * W * N     # stage-1 MXU contraction
                     + 2 * C * H * N        # stage-2 multiply + reduce
                     + 10 * (H + W) * N     # sampling-matrix build
                     + 7 * P * N))          # TPS term
    transcendentals = int(B * P * N)        # log in the TPS kernel
    bytes_accessed = int(B * (C * H * W * 2 + C * N * 4 + 2 * N * 4 + 6 * 4 + P * 4))
    cost = pl.CostEstimate(flops=flops, transcendentals=transcendentals,
                           bytes_accessed=bytes_accessed)

    kernel = partial(_transform_frame_kernel, C=C, H=H, W=W)
    out = pl.pallas_call(
        kernel,
        out_shape=jax.ShapeDtypeStruct((B, C, N), jnp.float32),
        grid=(B, n_tiles),
        in_specs=[
            pl.BlockSpec((1, C, H, W), lambda b, t: (b, 0, 0, 0)),   # image resident per b
            pl.BlockSpec(memory_space=pltpu.MemorySpace.SMEM),       # theta (B, 6)
            pl.BlockSpec((1, TN), lambda b, t: (0, t)),              # gx tile
            pl.BlockSpec((1, TN), lambda b, t: (0, t)),              # gy tile
            pl.BlockSpec((2, P), lambda b, t: (0, 0)),               # control points
            pl.BlockSpec((1, 1, P), lambda b, t: (b, 0, 0)),         # control params
        ],
        out_specs=pl.BlockSpec((1, C, TN), lambda b, t: (b, 0, t)),
        compiler_params=pltpu.CompilerParams(
            dimension_semantics=("parallel", "parallel"),   # b-axis splits v7x's 2 TCs
            vmem_limit_bytes=vmem_limit),
        cost_estimate=cost,
    )(img_bf, theta_flat, gx_full, gy_full, cp2, cw3)
    return out.reshape(B, C, H, W)


# ----------------------------------------------------------------------------
# EquivarianceLoss forward (keypoint warp + MSE stays in plain JAX: it is a few
# hundred FLOPs on vreg-sized arrays, so a Pallas launch would cost far more
# than the compute; XLA fuses it trivially.)
# ----------------------------------------------------------------------------
def equivariance_loss_pallas(x_s_256, x_s_kp, motion_extractor,
                             theta, control_points, control_params):
    B = x_s_256.shape[0]
    original_kp = x_s_kp.reshape(B, -1, 3)

    transformed_image = transform_frame_pallas(
        x_s_256, theta, control_points, control_params)
    transformed_kp = motion_extractor(transformed_image)["kp"].reshape(B, -1, 3)

    reverse_kp = warp_coordinates_jax(transformed_kp[..., :2], theta,
                                      control_points, control_params)
    return jnp.mean((original_kp[..., :2] - reverse_kp) ** 2)


# TODO(synk): motion_extractor is an arbitrary external network argument in the
# PyTorch module; here it is a small deterministic stand-in in plain JAX.
def make_motion_extractor(key, C, num_kp):
    k1, k2 = jax.random.split(key)
    w = 0.5 * jax.random.normal(k1, (C, num_kp * 3), dtype=jnp.float32)
    bias = 0.1 * jax.random.normal(k2, (num_kp * 3,), dtype=jnp.float32)

    def motion_extractor(img):                  # img: (B, C, H, W)
        feat = jnp.mean(img, axis=(2, 3))       # (B, C)
        kp = jnp.tanh(feat @ w + bias)          # (B, num_kp*3)
        return {"kp": kp}

    return motion_extractor


# ----------------------------------------------------------------------------
# Pure-JAX f32 reference (same math, XLA gathers) for validation
# ----------------------------------------------------------------------------
def _grid_sample_ref(frame, grid):
    B, C, H, W = frame.shape
    gx = grid[..., 0]
    gy = grid[..., 1]
    ix = (gx + 1.0) * 0.5 * (W - 1)
    iy = (gy + 1.0) * 0.5 * (H - 1)
    ix = jnp.clip(_reflect(ix, float(W - 1)), 0.0, float(W - 1))
    iy = jnp.clip(_reflect(iy, float(H - 1)), 0.0, float(H - 1))
    ix0f = jnp.floor(ix); iy0f = jnp.floor(iy)
    fx = ix - ix0f; fy = iy - iy0f
    ix0 = jnp.clip(ix0f.astype(jnp.int32), 0, W - 1)
    iy0 = jnp.clip(iy0f.astype(jnp.int32), 0, H - 1)
    ix1 = jnp.clip(ix0 + 1, 0, W - 1)
    iy1 = jnp.clip(iy0 + 1, 0, H - 1)
    flat = frame.reshape(B, C, H * W)

    def gather(iy_, ix_):
        idx = (iy_ * W + ix_).reshape(B, 1, H * W)
        idx = jnp.broadcast_to(idx, (B, C, H * W))
        return jnp.take_along_axis(flat, idx, axis=2).reshape(B, C, H, W)

    out = (gather(iy0, ix0) * ((1 - fx) * (1 - fy))[:, None]
           + gather(iy0, ix1) * (fx * (1 - fy))[:, None]
           + gather(iy1, ix0) * ((1 - fx) * fy)[:, None]
           + gather(iy1, ix1) * (fx * fy)[:, None])
    return out


def equivariance_loss_ref(x_s_256, x_s_kp, motion_extractor,
                          theta, control_points, control_params):
    B, C, H, W = x_s_256.shape
    original_kp = x_s_kp.reshape(B, -1, 3)
    base = make_coordinate_grid_2d((H, W)).reshape(1, H * W, 2)
    warped = warp_coordinates_jax(base, theta, control_points, control_params)
    grid = warped.reshape(B, H, W, 2)
    transformed_image = _grid_sample_ref(x_s_256, grid)
    transformed_kp = motion_extractor(transformed_image)["kp"].reshape(B, -1, 3)
    reverse_kp = warp_coordinates_jax(transformed_kp[..., :2], theta,
                                      control_points, control_params)
    return jnp.mean((original_kp[..., :2] - reverse_kp) ** 2)


# ----------------------------------------------------------------------------
if __name__ == "__main__":
    key = jax.random.PRNGKey(0)
    B, C, H, W = 2, 4, 16, 16
    num_kp = 8
    sigma_affine, sigma_tps, points_tps = 0.05, 0.005, 5
    P = points_tps ** 2

    k_img, k_kp, k_me, k_aff, k_tps = jax.random.split(key, 5)
    x_s_256 = jax.random.uniform(k_img, (B, C, H, W), dtype=jnp.float32)
    x_s_kp = 0.1 * jax.random.normal(k_kp, (B, num_kp * 3), dtype=jnp.float32)
    motion_extractor = make_motion_extractor(k_me, C, num_kp)

    # deterministic "random" TPS transform (torch.normal -> jax.random.normal)
    theta = (sigma_affine * jax.random.normal(k_aff, (B, 2, 3), dtype=jnp.float32)
             + jnp.eye(2, 3, dtype=jnp.float32)[None])
    control_points = make_coordinate_grid_2d((points_tps, points_tps)).reshape(P, 2)
    control_params = sigma_tps * jax.random.normal(k_tps, (B, 1, P), dtype=jnp.float32)

    loss = equivariance_loss_pallas(x_s_256, x_s_kp, motion_extractor,
                                    theta, control_points, control_params)
    loss = jax.block_until_ready(loss)

    loss_ref = equivariance_loss_ref(x_s_256, x_s_kp, motion_extractor,
                                     theta, control_points, control_params)
    loss_ref = jax.block_until_ready(loss_ref)

    assert jnp.isfinite(loss), loss
    assert jnp.allclose(loss, loss_ref, rtol=1e-2, atol=1e-4), (loss, loss_ref)
    print("KERNEL_OK")
</pallas_src>

<mosaic_0001>
module attributes {stable_mosaic.version = 11 : i64} {
  func.func @_transform_frame_kernel(%arg0: i32, %arg1: i32, %arg2: memref<1x4x16x16xbf16, #tpu.memory_space<vmem>>, %arg3: memref<2x6xf32, #tpu.memory_space<smem>>, %arg4: memref<1x256xf32, #tpu.memory_space<vmem>>, %arg5: memref<1x256xf32, #tpu.memory_space<vmem>>, %arg6: memref<2x25xf32, #tpu.memory_space<vmem>>, %arg7: memref<1x1x25xf32, #tpu.memory_space<vmem>>, %arg8: memref<1x4x256xf32, #tpu.memory_space<vmem>>) attributes {dimension_semantics = [#tpu.dimension_semantics<parallel>, #tpu.dimension_semantics<parallel>], iteration_bounds = array<i64: 2, 1>, scalar_prefetch = 0 : i64, scratch_operands = 0 : i64, tpu.core_type = #tpu.core_type<tc>, window_params = [{transform_indices = @transform_0, window_bounds = array<i64: 1, 4, 16, 16>}, {transform_indices = @transform_1, window_bounds = array<i64: 2, 6>}, {transform_indices = @transform_2, window_bounds = array<i64: 1, 256>}, {transform_indices = @transform_3, window_bounds = array<i64: 1, 256>}, {pipeline_mode = #tpu.pipeline_mode<synchronous>, transform_indices = @transform_4, window_bounds = array<i64: 2, 25>}, {transform_indices = @transform_5, window_bounds = array<i64: 1, 1, 25>}, {transform_indices = @transform_6, window_bounds = array<i64: 1, 4, 256>}]} {
    %c0 = arith.constant 0 : index
    %c0_0 = arith.constant 0 : index
    %0 = vector.load %arg4[%c0, %c0_0] : memref<1x256xf32, #tpu.memory_space<vmem>>, vector<1x256xf32>
    %1 = vector.shape_cast %0 : vector<1x256xf32> to vector<256xf32>
    %c0_1 = arith.constant 0 : index
    %c0_2 = arith.constant 0 : index
    %2 = vector.load %arg5[%c0_1, %c0_2] : memref<1x256xf32, #tpu.memory_space<vmem>>, vector<1x256xf32>
    %3 = vector.shape_cast %2 : vector<1x256xf32> to vector<256xf32>
    %4 = arith.index_cast %arg0 : i32 to index
    %c0_3 = arith.constant 0 : index
    %5 = memref.load %arg3[%4, %c0_3] : memref<2x6xf32, #tpu.memory_space<smem>>
    %6 = arith.index_cast %arg0 : i32 to index
    %c1 = arith.constant 1 : index
    %7 = memref.load %arg3[%6, %c1] : memref<2x6xf32, #tpu.memory_space<smem>>
    %8 = arith.index_cast %arg0 : i32 to index
    %c2 = arith.constant 2 : index
    %9 = memref.load %arg3[%8, %c2] : memref<2x6xf32, #tpu.memory_space<smem>>
    %10 = arith.index_cast %arg0 : i32 to index
    %c3 = arith.constant 3 : index
    %11 = memref.load %arg3[%10, %c3] : memref<2x6xf32, #tpu.memory_space<smem>>
    %12 = arith.index_cast %arg0 : i32 to index
    %c4 = arith.constant 4 : index
    %13 = memref.load %arg3[%12, %c4] : memref<2x6xf32, #tpu.memory_space<smem>>
    %14 = arith.index_cast %arg0 : i32 to index
    %c5 = arith.constant 5 : index
    %15 = memref.load %arg3[%14, %c5] : memref<2x6xf32, #tpu.memory_space<smem>>
    %16 = vector.broadcast %5 : f32 to vector<256xf32>
    %17 = arith.mulf %1, %16 : vector<256xf32>
    %18 = vector.broadcast %7 : f32 to vector<256xf32>
    %19 = arith.mulf %3, %18 : vector<256xf32>
    %20 = arith.addf %17, %19 : vector<256xf32>
    %21 = vector.broadcast %9 : f32 to vector<256xf32>
    %22 = arith.addf %20, %21 : vector<256xf32>
    %23 = vector.broadcast %11 : f32 to vector<256xf32>
    %24 = arith.mulf %1, %23 : vector<256xf32>
    %25 = vector.broadcast %13 : f32 to vector<256xf32>
    %26 = arith.mulf %3, %25 : vector<256xf32>
    %27 = arith.addf %24, %26 : vector<256xf32>
    %28 = vector.broadcast %15 : f32 to vector<256xf32>
    %29 = arith.addf %27, %28 : vector<256xf32>
    %c0_4 = arith.constant 0 : index
    %c0_5 = arith.constant 0 : index
    %30 = vector.load %arg6[%c0_4, %c0_5] : memref<2x25xf32, #tpu.memory_space<vmem>>, vector<1x25xf32>
    %31 = vector.shape_cast %30 : vector<1x25xf32> to vector<25xf32>
    %c1_6 = arith.constant 1 : index
    %c0_7 = arith.constant 0 : index
    %32 = vector.load %arg6[%c1_6, %c0_7] : memref<2x25xf32, #tpu.memory_space<vmem>>, vector<1x25xf32>
    %33 = vector.shape_cast %32 : vector<1x25xf32> to vector<25xf32>
    %c0_8 = arith.constant 0 : index
    %c0_9 = arith.constant 0 : index
    %c0_10 = arith.constant 0 : index
    %34 = vector.load %arg7[%c0_8, %c0_9, %c0_10] : memref<1x1x25xf32, #tpu.memory_space<vmem>>, vector<1x1x25xf32>
    %35 = vector.shape_cast %34 : vector<1x1x25xf32> to vector<25xf32>
    %36 = vector.shape_cast %31 : vector<25xf32> to vector<25x1xf32>
    %37 = vector.shape_cast %1 : vector<256xf32> to vector<1x256xf32>
    %38 = vector.broadcast %36 : vector<25x1xf32> to vector<25x256xf32>
    %39 = vector.broadcast %37 : vector<1x256xf32> to vector<25x256xf32>
    %40 = arith.subf %38, %39 : vector<25x256xf32>
    %41 = math.absf %40 : vector<25x256xf32>
    %42 = vector.shape_cast %33 : vector<25xf32> to vector<25x1xf32>
    %43 = vector.shape_cast %3 : vector<256xf32> to vector<1x256xf32>
    %44 = vector.broadcast %42 : vector<25x1xf32> to vector<25x256xf32>
    %45 = vector.broadcast %43 : vector<1x256xf32> to vector<25x256xf32>
    %46 = arith.subf %44, %45 : vector<25x256xf32>
    %47 = math.absf %46 : vector<25x256xf32>
    %48 = arith.addf %41, %47 : vector<25x256xf32>
    %49 = arith.mulf %48, %48 : vector<25x256xf32>
    %cst = arith.constant 9.99999997E-7 : f32
    %50 = vector.broadcast %cst : f32 to vector<25x256xf32>
    %51 = arith.addf %48, %50 : vector<25x256xf32>
    %52 = math.log %51 : vector<25x256xf32>
    %53 = arith.mulf %49, %52 : vector<25x256xf32>
    %54 = vector.shape_cast %35 : vector<25xf32> to vector<25x1xf32>
    %55 = vector.broadcast %54 : vector<25x1xf32> to vector<25x256xf32>
    %56 = arith.mulf %53, %55 : vector<25x256xf32>
    %cst_11 = arith.constant dense<0.000000e+00> : vector<256xf32>
    %57 = vector.multi_reduction <add>, %56, %cst_11 [0] : vector<25x256xf32> to vector<256xf32>
    %58 = arith.addf %22, %57 : vector<256xf32>
    %59 = arith.addf %29, %57 : vector<256xf32>
    %cst_12 = arith.constant 1.000000e+00 : f32
    %60 = vector.broadcast %cst_12 : f32 to vector<256xf32>
    %61 = arith.addf %58, %60 : vector<256xf32>
    %cst_13 = arith.constant 5.000000e-01 : f32
    %62 = vector.broadcast %cst_13 : f32 to vector<256xf32>
    %63 = arith.mulf %61, %62 : vector<256xf32>
    %cst_14 = arith.constant 1.500000e+01 : f32
    %64 = vector.broadcast %cst_14 : f32 to vector<256xf32>
    %65 = arith.mulf %63, %64 : vector<256xf32>
    %cst_15 = arith.constant 1.000000e+00 : f32
    %66 = vector.broadcast %cst_15 : f32 to vector<256xf32>
    %67 = arith.addf %59, %66 : vector<256xf32>
    %cst_16 = arith.constant 5.000000e-01 : f32
    %68 = vector.broadcast %cst_16 : f32 to vector<256xf32>
    %69 = arith.mulf %67, %68 : vector<256xf32>
    %cst_17 = arith.constant 1.500000e+01 : f32
    %70 = vector.broadcast %cst_17 : f32 to vector<256xf32>
    %71 = arith.mulf %69, %70 : vector<256xf32>
    %72 = math.absf %65 : vector<256xf32>
    %cst_18 = arith.constant 1.500000e+01 : f32
    %73 = vector.broadcast %cst_18 : f32 to vector<256xf32>
    %74 = arith.remf %72, %73 : vector<256xf32>
    %cst_19 = arith.constant 0.000000e+00 : f32
    %75 = vector.broadcast %cst_19 : f32 to vector<256xf32>
    %76 = arith.cmpf one, %74, %75 : vector<256xf32>
    %cst_20 = arith.constant 0.000000e+00 : f32
    %77 = vector.broadcast %cst_20 : f32 to vector<256xf32>
    %78 = arith.cmpf olt, %74, %77 : vector<256xf32>
    %cst_21 = arith.constant 0.000000e+00 : f32
    %79 = arith.cmpf olt, %cst_18, %cst_21 : f32
    %80 = vector.broadcast %79 : i1 to vector<256xi1>
    %81 = vector.broadcast %80 : vector<256xi1> to vector<256xi1>
    %82 = arith.xori %78, %81 : vector<256xi1>
    %83 = arith.andi %82, %76 : vector<256xi1>
    %84 = vector.broadcast %cst_18 : f32 to vector<256xf32>
    %85 = arith.addf %74, %84 : vector<256xf32>
    %86 = arith.select %83, %85, %74 : vector<256xi1>, vector<256xf32>
    %cst_22 = arith.constant 1.500000e+01 : f32
    %87 = vector.broadcast %cst_22 : f32 to vector<256xf32>
    %88 = arith.divf %72, %87 : vector<256xf32>
    %89 = math.floor %88 : vector<256xf32>
    %cst_23 = arith.constant 2.000000e+00 : f32
    %90 = vector.broadcast %cst_23 : f32 to vector<256xf32>
    %91 = arith.remf %89, %90 : vector<256xf32>
    %cst_24 = arith.constant 0.000000e+00 : f32
    %92 = vector.broadcast %cst_24 : f32 to vector<256xf32>
    %93 = arith.cmpf one, %91, %92 : vector<256xf32>
    %cst_25 = arith.constant 0.000000e+00 : f32
    %94 = vector.broadcast %cst_25 : f32 to vector<256xf32>
    %95 = arith.cmpf olt, %91, %94 : vector<256xf32>
    %cst_26 = arith.constant 0.000000e+00 : f32
    %96 = arith.cmpf olt, %cst_23, %cst_26 : f32
    %97 = vector.broadcast %96 : i1 to vector<256xi1>
    %98 = vector.broadcast %97 : vector<256xi1> to vector<256xi1>
    %99 = arith.xori %95, %98 : vector<256xi1>
    %100 = arith.andi %99, %93 : vector<256xi1>
    %101 = vector.broadcast %cst_23 : f32 to vector<256xf32>
    %102 = arith.addf %91, %101 : vector<256xf32>
    %103 = arith.select %100, %102, %91 : vector<256xi1>, vector<256xf32>
    %cst_27 = arith.constant 0.000000e+00 : f32
    %104 = vector.broadcast %cst_27 : f32 to vector<256xf32>
    %105 = arith.cmpf oeq, %103, %104 : vector<256xf32>
    %cst_28 = arith.constant 1.500000e+01 : f32
    %106 = vector.broadcast %cst_28 : f32 to vector<256xf32>
    %107 = arith.subf %106, %86 : vector<256xf32>
    %108 = arith.select %105, %86, %107 : vector<256xi1>, vector<256xf32>
    %cst_29 = arith.constant 0.000000e+00 : f32
    %cst_30 = arith.constant 1.500000e+01 : f32
    %109 = vector.broadcast %cst_29 : f32 to vector<256xf32>
    %110 = arith.maximumf %109, %108 : vector<256xf32>
    %111 = vector.broadcast %cst_30 : f32 to vector<256xf32>
    %112 = arith.minimumf %111, %110 : vector<256xf32>
    %113 = math.absf %71 : vector<256xf32>
    %cst_31 = arith.constant 1.500000e+01 : f32
    %114 = vector.broadcast %cst_31 : f32 to vector<256xf32>
    %115 = arith.remf %113, %114 : vector<256xf32>
    %cst_32 = arith.constant 0.000000e+00 : f32
    %116 = vector.broadcast %cst_32 : f32 to vector<256xf32>
    %117 = arith.cmpf one, %115, %116 : vector<256xf32>
    %cst_33 = arith.constant 0.000000e+00 : f32
    %118 = vector.broadcast %cst_33 : f32 to vector<256xf32>
    %119 = arith.cmpf olt, %115, %118 : vector<256xf32>
    %cst_34 = arith.constant 0.000000e+00 : f32
    %120 = arith.cmpf olt, %cst_31, %cst_34 : f32
    %121 = vector.broadcast %120 : i1 to vector<256xi1>
    %122 = vector.broadcast %121 : vector<256xi1> to vector<256xi1>
    %123 = arith.xori %119, %122 : vector<256xi1>
    %124 = arith.andi %123, %117 : vector<256xi1>
    %125 = vector.broadcast %cst_31 : f32 to vector<256xf32>
    %126 = arith.addf %115, %125 : vector<256xf32>
    %127 = arith.select %124, %126, %115 : vector<256xi1>, vector<256xf32>
    %cst_35 = arith.constant 1.500000e+01 : f32
    %128 = vector.broadcast %cst_35 : f32 to vector<256xf32>
    %129 = arith.divf %113, %128 : vector<256xf32>
    %130 = math.floor %129 : vector<256xf32>
    %cst_36 = arith.constant 2.000000e+00 : f32
    %131 = vector.broadcast %cst_36 : f32 to vector<256xf32>
    %132 = arith.remf %130, %131 : vector<256xf32>
    %cst_37 = arith.constant 0.000000e+00 : f32
    %133 = vector.broadcast %cst_37 : f32 to vector<256xf32>
    %134 = arith.cmpf one, %132, %133 : vector<256xf32>
    %cst_38 = arith.constant 0.000000e+00 : f32
    %135 = vector.broadcast %cst_38 : f32 to vector<256xf32>
    %136 = arith.cmpf olt, %132, %135 : vector<256xf32>
    %cst_39 = arith.constant 0.000000e+00 : f32
    %137 = arith.cmpf olt, %cst_36, %cst_39 : f32
    %138 = vector.broadcast %137 : i1 to vector<256xi1>
    %139 = vector.broadcast %138 : vector<256xi1> to vector<256xi1>
    %140 = arith.xori %136, %139 : vector<256xi1>
    %141 = arith.andi %140, %134 : vector<256xi1>
    %142 = vector.broadcast %cst_36 : f32 to vector<256xf32>
    %143 = arith.addf %132, %142 : vector<256xf32>
    %144 = arith.select %141, %143, %132 : vector<256xi1>, vector<256xf32>
    %cst_40 = arith.constant 0.000000e+00 : f32
    %145 = vector.broadcast %cst_40 : f32 to vector<256xf32>
    %146 = arith.cmpf oeq, %144, %145 : vector<256xf32>
    %cst_41 = arith.constant 1.500000e+01 : f32
    %147 = vector.broadcast %cst_41 : f32 to vector<256xf32>
    %148 = arith.subf %147, %127 : vector<256xf32>
    %149 = arith.select %146, %127, %148 : vector<256xi1>, vector<256xf32>
    %cst_42 = arith.constant 0.000000e+00 : f32
    %cst_43 = arith.constant 1.500000e+01 : f32
    %150 = vector.broadcast %cst_42 : f32 to vector<256xf32>
    %151 = arith.maximumf %150, %149 : vector<256xf32>
    %152 = vector.broadcast %cst_43 : f32 to vector<256xf32>
    %153 = arith.minimumf %152, %151 : vector<256xf32>
    %154 = math.floor %112 : vector<256xf32>
    %155 = math.floor %153 : vector<256xf32>
    %156 = arith.subf %112, %154 : vector<256xf32>
    %157 = arith.subf %153, %155 : vector<256xf32>
    %158 = arith.fptosi %154 : vector<256xf32> to vector<256xi32>
    %c0_i32 = arith.constant 0 : i32
    %c15_i32 = arith.constant 15 : i32
    %159 = vector.broadcast %c0_i32 : i32 to vector<256xi32>
    %160 = arith.maxsi %159, %158 : vector<256xi32>
    %161 = vector.broadcast %c15_i32 : i32 to vector<256xi32>
    %162 = arith.minsi %161, %160 : vector<256xi32>
    %163 = arith.fptosi %155 : vector<256xf32> to vector<256xi32>
    %c0_i32_44 = arith.constant 0 : i32
    %c15_i32_45 = arith.constant 15 : i32
    %164 = vector.broadcast %c0_i32_44 : i32 to vector<256xi32>
    %165 = arith.maxsi %164, %163 : vector<256xi32>
    %166 = vector.broadcast %c15_i32_45 : i32 to vector<256xi32>
    %167 = arith.minsi %166, %165 : vector<256xi32>
    %c1_i32 = arith.constant 1 : i32
    %168 = vector.broadcast %c1_i32 : i32 to vector<256xi32>
    %169 = arith.addi %162, %168 : vector<256xi32>
    %c0_i32_46 = arith.constant 0 : i32
    %c15_i32_47 = arith.constant 15 : i32
    %170 = vector.broadcast %c0_i32_46 : i32 to vector<256xi32>
    %171 = arith.maxsi %170, %169 : vector<256xi32>
    %172 = vector.broadcast %c15_i32_47 : i32 to vector<256xi32>
    %173 = arith.minsi %172, %171 : vector<256xi32>
    %c1_i32_48 = arith.constant 1 : i32
    %174 = vector.broadcast %c1_i32_48 : i32 to vector<256xi32>
    %175 = arith.addi %167, %174 : vector<256xi32>
    %c0_i32_49 = arith.constant 0 : i32
    %c15_i32_50 = arith.constant 15 : i32
    %176 = vector.broadcast %c0_i32_49 : i32 to vector<256xi32>
    %177 = arith.maxsi %176, %175 : vector<256xi32>
    %178 = vector.broadcast %c15_i32_50 : i32 to vector<256xi32>
    %179 = arith.minsi %178, %177 : vector<256xi32>
    %180 = tpu.iota {dimensions = array<i32: 0>} : vector<16x1xi32>
    %181 = tpu.iota {dimensions = array<i32: 0>} : vector<16x1xi32>
    %182 = vector.shape_cast %162 : vector<256xi32> to vector<1x256xi32>
    %183 = vector.broadcast %180 : vector<16x1xi32> to vector<16x256xi32>
    %184 = vector.broadcast %182 : vector<1x256xi32> to vector<16x256xi32>
    %185 = arith.cmpi eq, %183, %184 : vector<16x256xi32>
    %cst_51 = arith.constant 1.000000e+00 : f32
    %186 = vector.broadcast %cst_51 : f32 to vector<256xf32>
    %187 = arith.subf %186, %156 : vector<256xf32>
    %188 = vector.shape_cast %187 : vector<256xf32> to vector<1x256xf32>
    %cst_52 = arith.constant 0.000000e+00 : f32
    %189 = vector.shape_cast %188 : vector<1x256xf32> to vector<1x256xf32>
    %190 = vector.broadcast %189 : vector<1x256xf32> to vector<16x256xf32>
    %191 = vector.broadcast %cst_52 : f32 to vector<16x256xf32>
    %192 = arith.select %185, %190, %191 : vector<16x256xi1>, vector<16x256xf32>
    %193 = vector.shape_cast %173 : vector<256xi32> to vector<1x256xi32>
    %194 = vector.broadcast %180 : vector<16x1xi32> to vector<16x256xi32>
    %195 = vector.broadcast %193 : vector<1x256xi32> to vector<16x256xi32>
    %196 = arith.cmpi eq, %194, %195 : vector<16x256xi32>
    %197 = vector.shape_cast %156 : vector<256xf32> to vector<1x256xf32>
    %cst_53 = arith.constant 0.000000e+00 : f32
    %198 = vector.shape_cast %197 : vector<1x256xf32> to vector<1x256xf32>
    %199 = vector.broadcast %198 : vector<1x256xf32> to vector<16x256xf32>
    %200 = vector.broadcast %cst_53 : f32 to vector<16x256xf32>
    %201 = arith.select %196, %199, %200 : vector<16x256xi1>, vector<16x256xf32>
    %202 = arith.addf %192, %201 : vector<16x256xf32>
    %203 = vector.shape_cast %167 : vector<256xi32> to vector<1x256xi32>
    %204 = vector.broadcast %181 : vector<16x1xi32> to vector<16x256xi32>
    %205 = vector.broadcast %203 : vector<1x256xi32> to vector<16x256xi32>
    %206 = arith.cmpi eq, %204, %205 : vector<16x256xi32>
    %cst_54 = arith.constant 1.000000e+00 : f32
    %207 = vector.broadcast %cst_54 : f32 to vector<256xf32>
    %208 = arith.subf %207, %157 : vector<256xf32>
    %209 = vector.shape_cast %208 : vector<256xf32> to vector<1x256xf32>
    %cst_55 = arith.constant 0.000000e+00 : f32
    %210 = vector.shape_cast %209 : vector<1x256xf32> to vector<1x256xf32>
    %211 = vector.broadcast %210 : vector<1x256xf32> to vector<16x256xf32>
    %212 = vector.broadcast %cst_55 : f32 to vector<16x256xf32>
    %213 = arith.select %206, %211, %212 : vector<16x256xi1>, vector<16x256xf32>
    %214 = vector.shape_cast %179 : vector<256xi32> to vector<1x256xi32>
    %215 = vector.broadcast %181 : vector<16x1xi32> to vector<16x256xi32>
    %216 = vector.broadcast %214 : vector<1x256xi32> to vector<16x256xi32>
    %217 = arith.cmpi eq, %215, %216 : vector<16x256xi32>
    %218 = vector.shape_cast %157 : vector<256xf32> to vector<1x256xf32>
    %cst_56 = arith.constant 0.000000e+00 : f32
    %219 = vector.shape_cast %218 : vector<1x256xf32> to vector<1x256xf32>
    %220 = vector.broadcast %219 : vector<1x256xf32> to vector<16x256xf32>
    %221 = vector.broadcast %cst_56 : f32 to vector<16x256xf32>
    %222 = arith.select %217, %220, %221 : vector<16x256xi1>, vector<16x256xf32>
    %223 = arith.addf %213, %222 : vector<16x256xf32>
    %224 = arith.truncf %202 : vector<16x256xf32> to vector<16x256xbf16>
    %c0_57 = arith.constant 0 : index
    %c0_58 = arith.constant 0 : index
    %c0_59 = arith.constant 0 : index
    %c0_60 = arith.constant 0 : index
    %225 = vector.load %arg2[%c0_57, %c0_58, %c0_59, %c0_60] : memref<1x4x16x16xbf16, #tpu.memory_space<vmem>>, vector<1x1x16x16xbf16>
    %226 = vector.shape_cast %225 : vector<1x1x16x16xbf16> to vector<16x16xbf16>
    %cst_61 = arith.constant dense<0.000000e+00> : vector<16x256xf32>
    %227 = tpu.matmul %226, %224, %cst_61 {dimension_numbers = #tpu.dot_dimension_numbers<[1], [0], [0], [1], [0, 0, 1, 1], [], []>} : vector<16x16xbf16>, vector<16x256xbf16>, vector<16x256xf32> -> vector<16x256xf32>
    %228 = arith.mulf %227, %223 : vector<16x256xf32>
    %cst_62 = arith.constant dense<0.000000e+00> : vector<256xf32>
    %229 = vector.multi_reduction <add>, %228, %cst_62 [0] : vector<16x256xf32> to vector<256xf32>
    %c0_63 = arith.constant 0 : index
    %c1_64 = arith.constant 1 : index
    %c0_65 = arith.constant 0 : index
    %c0_66 = arith.constant 0 : index
    %230 = vector.load %arg2[%c0_63, %c1_64, %c0_65, %c0_66] : memref<1x4x16x16xbf16, #tpu.memory_space<vmem>>, vector<1x1x16x16xbf16>
    %231 = vector.shape_cast %230 : vector<1x1x16x16xbf16> to vector<16x16xbf16>
    %cst_67 = arith.constant dense<0.000000e+00> : vector<16x256xf32>
    %232 = tpu.matmul %231, %224, %cst_67 {dimension_numbers = #tpu.dot_dimension_numbers<[1], [0], [0], [1], [0, 0, 1, 1], [], []>} : vector<16x16xbf16>, vector<16x256xbf16>, vector<16x256xf32> -> vector<16x256xf32>
    %233 = arith.mulf %232, %223 : vector<16x256xf32>
    %cst_68 = arith.constant dense<0.000000e+00> : vector<256xf32>
    %234 = vector.multi_reduction <add>, %233, %cst_68 [0] : vector<16x256xf32> to vector<256xf32>
    %c0_69 = arith.constant 0 : index
    %c2_70 = arith.constant 2 : index
    %c0_71 = arith.constant 0 : index
    %c0_72 = arith.constant 0 : index
    %235 = vector.load %arg2[%c0_69, %c2_70, %c0_71, %c0_72] : memref<1x4x16x16xbf16, #tpu.memory_space<vmem>>, vector<1x1x16x16xbf16>
    %236 = vector.shape_cast %235 : vector<1x1x16x16xbf16> to vector<16x16xbf16>
    %cst_73 = arith.constant dense<0.000000e+00> : vector<16x256xf32>
    %237 = tpu.matmul %236, %224, %cst_73 {dimension_numbers = #tpu.dot_dimension_numbers<[1], [0], [0], [1], [0, 0, 1, 1], [], []>} : vector<16x16xbf16>, vector<16x256xbf16>, vector<16x256xf32> -> vector<16x256xf32>
    %238 = arith.mulf %237, %223 : vector<16x256xf32>
    %cst_74 = arith.constant dense<0.000000e+00> : vector<256xf32>
    %239 = vector.multi_reduction <add>, %238, %cst_74 [0] : vector<16x256xf32> to vector<256xf32>
    %c0_75 = arith.constant 0 : index
    %c3_76 = arith.constant 3 : index
    %c0_77 = arith.constant 0 : index
    %c0_78 = arith.constant 0 : index
    %240 = vector.load %arg2[%c0_75, %c3_76, %c0_77, %c0_78] : memref<1x4x16x16xbf16, #tpu.memory_space<vmem>>, vector<1x1x16x16xbf16>
    %241 = vector.shape_cast %240 : vector<1x1x16x16xbf16> to vector<16x16xbf16>
    %cst_79 = arith.constant dense<0.000000e+00> : vector<16x256xf32>
    %242 = tpu.matmul %241, %224, %cst_79 {dimension_numbers = #tpu.dot_dimension_numbers<[1], [0], [0], [1], [0, 0, 1, 1], [], []>} : vector<16x16xbf16>, vector<16x256xbf16>, vector<16x256xf32> -> vector<16x256xf32>
    %243 = arith.mulf %242, %223 : vector<16x256xf32>
    %cst_80 = arith.constant dense<0.000000e+00> : vector<256xf32>
    %244 = vector.multi_reduction <add>, %243, %cst_80 [0] : vector<16x256xf32> to vector<256xf32>
    %245 = vector.shape_cast %229 : vector<256xf32> to vector<1x256xf32>
    %246 = vector.shape_cast %234 : vector<256xf32> to vector<1x256xf32>
    %247 = vector.shape_cast %239 : vector<256xf32> to vector<1x256xf32>
    %248 = vector.shape_cast %244 : vector<256xf32> to vector<1x256xf32>
    %249 = tpu.concatenate %245, %246, %247, %248 in 0 : vector<1x256xf32>, vector<1x256xf32>, vector<1x256xf32>, vector<1x256xf32> -> vector<4x256xf32>
    %c0_81 = arith.constant 0 : index
    %c0_82 = arith.constant 0 : index
    %c0_83 = arith.constant 0 : index
    %250 = vector.load %arg8[%c0_81, %c0_82, %c0_83] : memref<1x4x256xf32, #tpu.memory_space<vmem>>, vector<1x4x256xf32>
    %251 = vector.shape_cast %250 : vector<1x4x256xf32> to vector<4x256xf32>
    %252 = vector.shape_cast %249 : vector<4x256xf32> to vector<1x4x256xf32>
    tpu.vector_store %arg8[%c0_81, %c0_82, %c0_83], %252 {strides = array<i32>} : memref<1x4x256xf32, #tpu.memory_space<vmem>>, vector<1x4x256xf32>,
    return
  }
  func.func @transform_0(%arg0: i32, %arg1: i32) -> (i32, i32, i32, i32) {
    %c0_i32 = arith.constant 0 : i32
    %c0_i32_0 = arith.constant 0 : i32
    %c0_i32_1 = arith.constant 0 : i32
    %c0_i32_2 = arith.constant 0 : i32
    return %arg0, %c0_i32, %c0_i32_0, %c0_i32_1 : i32, i32, i32, i32
  }
  func.func @transform_1(%arg0: i32, %arg1: i32) -> (i32, i32) {
    %c0_i32 = arith.constant 0 : i32
    %c0_i32_0 = arith.constant 0 : i32
    %c0_i32_1 = arith.constant 0 : i32
    return %c0_i32, %c0_i32_0 : i32, i32
  }
  func.func @transform_2(%arg0: i32, %arg1: i32) -> (i32, i32) {
    %c0_i32 = arith.constant 0 : i32
    %c0_i32_0 = arith.constant 0 : i32
    return %c0_i32, %arg1 : i32, i32
  }
  func.func @transform_3(%arg0: i32, %arg1: i32) -> (i32, i32) {
    %c0_i32 = arith.constant 0 : i32
    %c0_i32_0 = arith.constant 0 : i32
    return %c0_i32, %arg1 : i32, i32
  }
  func.func @transform_4(%arg0: i32, %arg1: i32) -> (i32, i32) {
    %c0_i32 = arith.constant 0 : i32
    %c0_i32_0 = arith.constant 0 : i32
    %c0_i32_1 = arith.constant 0 : i32
    return %c0_i32, %c0_i32_0 : i32, i32
  }
  func.func @transform_5(%arg0: i32, %arg1: i32) -> (i32, i32, i32) {
    %c0_i32 = arith.constant 0 : i32
    %c0_i32_0 = arith.constant 0 : i32
    %c0_i32_1 = arith.constant 0 : i32
    return %arg0, %c0_i32, %c0_i32_0 : i32, i32, i32
  }
  func.func @transform_6(%arg0: i32, %arg1: i32) -> (i32, i32, i32) {
    %c0_i32 = arith.constant 0 : i32
    %c0_i32_0 = arith.constant 0 : i32
    return %arg0, %c0_i32, %arg1 : i32, i32, i32
  }
}

</mosaic_0001>

<bundles_post_ra>
// kernel: tpu_custom_call.1
= control target key start
LH: loop header
LB: loop body
LE: loop exit
PB: predicated region body
PF: predicated region fallthrough
CT: control target
= control target key end

     0   :  { %s1931_s0 = inlined_call_operand.hbm [shape: bf16[2,4,16,16], index: 0, kind: input, shape index: {}]   ;;  %s1932_s1 = inlined_call_operand.vmem [shape: f32[2,6], index: 1, kind: input, shape index: {}]   ;;  %s1933_s2 = inlined_call_operand.vmem [shape: f32[1,256], index: 2, kind: input, shape index: {}]   ;;  %s1934_s3 = inlined_call_operand.vmem [shape: f32[1,256], index: 3, kind: input, shape index: {}]   ;;  %s1935_s4 = inlined_call_operand.vmem [shape: f32[2,25], index: 4, kind: input, shape index: {}]   ;;  %s1936_s5 = inlined_call_operand.vmem [shape: f32[2,1,25], index: 5, kind: input, shape index: {}]   ;;  %s1937_s6 = inlined_call_operand.hbm [shape: f32[2,4,256], index: 6, kind: output, shape index: {}]  }
   0x1   :  { %1942 = sst [smem:[#allocation11_spill]] %s1932_s1 }
   0x2   :  { %11 = vsyncpa [#allocation3], 0 }
   0x3   :  { %13 = vsyncpa [#allocation3 + $0x1], 0 }
   0x4   :  { %14 = vsyncpa [#allocation5], 0 }
   0x5   :  { %15 = vsyncpa [#allocation4], 0 }
   0x6   :  { %17 = vsyncpa [#allocation4 + $0x1], 0  ;;  %s1584_s21 = smov 0   ;;  %s1586_s22 = smov 0  }
   0x7   :  { %s1588_s23 = smov 0   ;;  %s1590_s24 = smov 0  }
   0x8   :  { %s1592_s25 = smov 0   ;;  %s1594_s26 = smov 0  }
   0x9 LB: > { %s1269_s27 = sadd.s32 4294967295, %s1540_s26   ;;  %s1270_s28 = sadd.s32 4294967294, %s1540_s26   ;;  %s1540_s26 = sphi %s1594_s26, %s23_s26   ;;  %s1536_s25 = sphi %s1592_s25, %s1963_s25   ;;  %s1532_s24 = sphi %s1590_s24, %s1962_s24   ;;  %s1528_s23 = sphi %s1588_s23, %s1961_s23   ;;  %s1524_s22 = sphi %s1586_s22, %s1960_s22   ;;  %s1520_s21 = sphi %s1584_s21, %s1959_s21  }
   0xa   : > { %p49_p0 = scmp.ne.s32.totalorder %s1528_s23, %s1524_s22  ;;  %p50_p1 = scmp.eq.s32.totalorder %s1540_s26, 0 }
   0xb   : > { %p55_p2 = scmp.ne.s32.totalorder %s1524_s22, %s1520_s21  ;;  %p1622_p3 = scmp.eq.s32.totalorder %s1269_s27, 0 }
   0xc   : > { %p201_p4 = scmp.eq.s32.totalorder %s1269_s27, 1  ;;  %p1626_p5 = por %p50_p1, %p49_p0 }
   0xd   : > { %s1943_s30 = scalar_select %p1622_p3, 1, 0 }
   0xe   : > { %p207_p6 = scmp.eq.s32.totalorder %s1270_s28, 1  ;;  %p1632_p7 = por %p1622_p3, %p55_p2 }
   0xf   : > { %p1636_p8 = por %p201_p4, %p49_p0  ;;  %p1271_p10 = scmp.ge.s32.totalorder %s1540_s26, 1 }
  0x10   : > { %s1945_s8 = scalar_select %p1632_p7, 1, 0 }
  0x11   : > { %s1946_s9 = scalar_select %p1636_p8, 1, 0 }
  0x12   : > { %p1640_p9 = por %p207_p6, %p55_p2  ;;  %p214_p11 = scmp.lt.s32.totalorder %s1540_s26, 3 }
  0x13   : > { %s1948_s1 = sld [smem:[#allocation11_spill]]  ;;  %p1333_p0 = scmp.lt.s32.totalorder %s1540_s26, 2 }
  0x14   : > { %s1947_s10 = scalar_select %p1640_p9, 1, 0 }
  0x15   : > { %p1649_p12 = pnand %p1271_p10, %p214_p11  ;;  %p1659_p2 = pnand %p1333_p0, %p1626_p5 }
  0x16   : > { %s35_s17 = sadd.s32 1, %s1536_s25  ;;  %s257_s19 = sand.u32 1, %s1528_s23  }
  0x17   : > { %p1320_p1 = pneg %p1649_p12  ;;  %p1670_p6 = scmp.ge.s32.totalorder %s35_s17, 2 }
  0x19   : > { %s227_s13 = sshll.u32 %s1948_s1, 4  ;;  %p1665_p4 = pnand %p1320_p1, %p1622_p3  ;;  %s228_s13 = int_to_ptr.vmem [resolvable:$true] %s227_s13 }
  0x1a   : > { %s1409_s20 = scalar_lea.vmem %s228_s13, 32  ;;  %p1417_p13 = scmp.lt.s32.totalorder %s228_s13, %s228_s13 }
  0x1b   : > { %p1410_p10 = scmp.ne.s32.totalorder %s228_s13, %s1409_s20  ;;  %p1411_p11 = pneg %p1665_p4 }
  0x1c   : > { %p1418_p9 = scmp.lt.s32.totalorder %s1409_s20, %s1409_s20 }
  0x1d   : > { %p1412_p5 = pnand %p1411_p11, %p1410_p10 }
  0x1e   : > { %p1419_p8 = por %p1418_p9, %p1417_p13 }
  0x1f   : > { %p1413_p0 = pneg %p1412_p5 }
  0x21   : > { %p1420_p1 = pnand %p1419_p8, %p1413_p0 }
  0x23   : > { %1423 = shalt.err (!%p1420_p1)
}
  0x24   : > { %s1542_s27 = smov [#allocation6]   ;;  %s1965_s17 = smov (%p1670_p6, %s35_s17), 0 }
  0x25   : > { %1323 = dma.vmem_to_smem (!%p1665_p4), %s228_s13, 32, %s1542_s27, [#allocation5]  }
  0x26   : > { %s1276_s28 = sshll.u32 %s257_s19, 5  ;;  %s39_s7 = ssub.s32 %s1536_s25, %s1965_s17 }
  0x27   : > { %p40_p9 = scmp.eq.s32.totalorder %s39_s7, 0  ;;  %s1306_s11 = sshll.u32 %s1536_s25, 9 }
  0x28   : > { %s1689_s16 = scalar_lea.hbm %s1931_s0, %s1306_s11  ;;  %s261_s29 = scalar_lea.vmem [#allocation2], %s1276_s28 }
  0x29   : > { %s268_s1 = sshll.u32 %s261_s29, 4  ;;  %s1953_s13 = sadd.s32 1, %s1528_s23  ;;  %s1696_s1 = int_to_ptr.vmem [resolvable:$true] %s268_s1 }
  0x2a   : > { %s1694_s18 = scalar_select %p40_p9, %s1528_s23, %s1953_s13  }
  0x2b   : > { %s1698_s27 = scalar_lea.sflag [#allocation3], %s257_s19  ;;  %s1424_s7 = scalar_lea.hbm %s1689_s16, 512 }
  0x2c   : > { %p1425_p8 = scmp.ne.s32.totalorder %s1689_s16, %s1424_s7  ;;  %p1426_p13 = pneg %p1659_p2 }
  0x2d   : > { %s1429_s28 = scalar_lea.hbm %s1931_s0, 1024  ;;  %p1430_p10 = scmp.lt.u32.totalorder %s1689_s16, %s1931_s0 }
  0x2e   : > { %p1427_p4 = pnand %p1426_p13, %p1425_p8  ;;  %p1431_p11 = scmp.lt.u32.totalorder %s1429_s28, %s1424_s7 }
  0x2f   : > { %p1433_p0 = scmp.lt.u32.totalorder %s1424_s7, %s1689_s16 }
  0x30   : > { %p1428_p6 = pneg %p1427_p4  ;;  %p1432_p5 = por %p1431_p11, %p1430_p10 }
  0x32   : > { %p1434_p1 = por %p1433_p0, %p1432_p5 }
  0x34   : > { %p1435_p9 = pnand %p1434_p1, %p1428_p6 }
  0x36   : > { %1438 = shalt.err (!%p1435_p9)
}
  0x37   : > { %s1439_s19 = scalar_lea.vmem %s1696_s1, 512  ;;  %s1543_s13 = smov [#allocation2]  }
  0x38   : > { %p1440_p8 = scmp.ne.s32.totalorder %s1696_s1, %s1439_s19  ;;  %s1444_s11 = sshll.u32 %s1543_s13, 4  ;;  %s1445_s11 = int_to_ptr.vmem [resolvable:$false] %s1444_s11 }
  0x39   : > { %s1446_s12 = scalar_lea.vmem %s1445_s11, 1024  ;;  %p1447_p7 = scmp.lt.s32.totalorder %s1696_s1, %s1445_s11 }
  0x3a   : > { %p1442_p4 = pnand %p1440_p8, %p1426_p13  ;;  %p1448_p10 = scmp.lt.s32.totalorder %s1446_s12, %s1439_s19 }
  0x3c   : > { %p1443_p3 = pneg %p1442_p4  ;;  %p1449_p11 = por %p1448_p10, %p1447_p7 }
  0x3e   : > { %p1450_p5 = pnand %p1449_p11, %p1443_p3 }
  0x40   : > { %1453 = shalt.err (!%p1450_p5)
}
  0x41   : > { %s1544_s7 = smov 64   ;;  %s1545_s28 = smov 4  }
  0x42   : > { %1327 = dma.hbm_to_vmem [thread:$0]  (!%p1659_p2), %s1689_s16, 512, %s1696_s1, %s1698_s27, %s1544_s7, %s1544_s7, %s1545_s28  }
  0x43   : > { %286 = sbr.rel (%p1649_p12) target bundleno = 580 (0x244), region = 44  ;;  %s1729_s29 = sand.u32 (!%p1649_p12), 1, %s1524_s22  }
  0x44   : > { %s1280_s20 = sshll.u32 (!%p1649_p12), %s1729_s29, 5  ;;  %s289_s19 = scalar_lea.sflag (!%p1649_p12), [#allocation3], %s1729_s29 }
  0x45   : > { %s1733_s13 = scalar_lea.vmem (!%p1649_p12), [#allocation2], %s1280_s20  ;;  %p1954_p3 = scmp.ne.s32.totalorder (!%p1649_p12), %s1945_s8, 0 }
  0x4a   : > { %1507 = dma.done.wait (%p1954_p3), %s289_s19, 512  }
  0x4b   : > { %1509 = vsyncadd (%p1954_p3), %s289_s19, 4294966784  ;;  %p1955_p7 = scmp.ne.s32.totalorder %s1943_s30, 0 }
  0x4d   : > { %1511 = dma.done.wait (%p1955_p7), [#allocation5], 32  }
  0x4e   : > { %1513 = vsyncadd (%p1955_p7), [#allocation5], 4294967264 }
  0x4f   : > { %301 = sfence }
  0x50   : > { %v1285_v0 = vld [vmem:[%s1935_s4 + $0x1] ss:$0 sm:$0xff]  ;;  %v1284_v1 = vld [vmem:[%s1935_s4] ss:$0 sm:$0xff]  ;;  %s1750_s8 = sshll.u32 %s1532_s24, 7  ;;  %p347_p12 = scmp.lt.s32.totalorder %s1532_s24, 1  ;;  %v403_v10 = vlaneseq }
  0x51   : > { %434 = vbcast.lane.b32.xlu1 %v1285_v0, 256  ;;  %388 = vbcast.lane.b32.xlu0 %v1284_v1, 256  ;;  %s362_s30 = sadd.s32 4, %s1750_s8  ;;  %s360_s11 = sadd.s32 3, %s1750_s8  ;;  %v1759_v3 = vld [vmem:[%s1934_s3] sm:$0x3] }
  0x52   : > { %s363_s27 = sld [smem:[#allocation6 + %s362_s30]]  ;;  %s1967_s24 = smov (!%p347_p12, %s1532_s24), 1  ;;  %v1768_v5 = vld [vmem:[%s1933_s2] sm:$0x3]  ;;  %v1773_v11 = vshrl.u32 %v403_v10, 7  ;;  %v1546_v18 = vmov 0  }
  0x53   : > { %s361_s12 = sld [smem:[#allocation6 + %s360_s11]]  ;;  %s349_s1 = scalar_lea.vmem %s1936_s5, %s1967_s24  ;;  %868 = vmatprep.mubr.bf16.mxu0 %v1546_v18  ;;  %940 = vmatprep.mubr.bf16.mxu1 %v1546_v18  ;;  %vm552_vm0 = vcmask 1040384  }
  0x54   : > { %v1286_v8 = vld [vmem:[%s349_s1] ss:$0 sm:$0xff]  ;;  %v1776_v12 = vsub.s32 0, %v1773_v11  ;;  %v1779_v13 = vsub.s32 1, %v1773_v11  ;;  %s356_s24 = sadd.s32 1, %s1750_s8  ;;  %s355_s30 = sld [smem:[#allocation6 + %s1750_s8]] }
  0x55   : > { %438 = vbcast.lane.b32.xlu1 %v1285_v0, 264  ;;  %392 = vbcast.lane.b32.xlu0 %v1284_v1, 264  ;;  %s357_s16 = sld [smem:[#allocation6 + %s356_s24]]  ;;  %s364_s11 = sadd.s32 5, %s1750_s8 }
  0x56   : > { %v452_v14 = vrot.slane %v1759_v3, %v1776_v12  ;;  %v456_v15 = vrot.slane %v1759_v3, %v1779_v13  ;;  %v406_v16 = vrot.slane %v1768_v5, %v1776_v12  ;;  %v410_v17 = vrot.slane %v1768_v5, %v1779_v13  ;;  %s365_s7 = sld [smem:[#allocation6 + %s364_s11]]  ;;  %s1882_s14 = scalar_lea.hbm %s1937_s6, %s1750_s8 }
  0x57   : > { %s1127_s15 = scalar_lea.sflag [#allocation4], %s1729_s29  ;;  %p1956_p13 = scmp.ne.s32.totalorder %s1946_s9, 0 }
  0x58   : > { %v375_v2 = vstv %s363_s27  ;;  %s358_s27 = sadd.s32 2, %s1750_s8 }
  0x59   : > { %442 = vbcast.lane.b32.xlu1 %v1285_v0, 272  ;;  %396 = vbcast.lane.b32.xlu0 %v1284_v1, 272  ;;  %v376_v4 = vmul.f32 %v375_v2, %v1759_v3  ;;  %v373_v6 = vstv %s361_s12  ;;  %s359_s12 = sld [smem:[#allocation6 + %s358_s27]] }
  0x5a   : > { %v374_v7 = vmul.f32 %v373_v6, %v1768_v5 }
  0x5c   : > { %v1771_v9 = vadd.f32 %v376_v4, %v374_v7 }
  0x5d   : > { %446 = vbcast.lane.b32.xlu1 %v1285_v0, 280  ;;  %400 = vbcast.lane.b32.xlu0 %v1284_v1, 280 }
  0x61   : > { %528 = vbcast.lane.b32.xlu0 %v1286_v8, 256  ;;  %532 = vbcast.lane.b32.xlu1 %v1286_v8, 264 }
  0x65   : > { %536 = vbcast.lane.b32.xlu0 %v1286_v8, 272  ;;  %540 = vbcast.lane.b32.xlu1 %v1286_v8, 280 }
  0xc3   : > { %v435_v19 = vpop.permute.xlu1 %434  ;;  %v389_v20 = vpop.permute.xlu0 %388 }
  0xc4   : > { %v459_v21 = vsub.f32 %v435_v19, %v452_v14  ;;  %v460_v22 = vsub.f32 %v435_v19, %v456_v15  ;;  %v413_v23 = vsub.f32 %v389_v20, %v406_v16  ;;  %v414_v24 = vsub.f32 %v389_v20, %v410_v17 }
  0xc6   : > { %v467_v25 = vand.u32 2147483647, %v459_v21  ;;  %v468_v26 = vand.u32 2147483647, %v460_v22  ;;  %v421_v27 = vand.u32 2147483647, %v413_v23 }
  0xc7   : > { %v422_v28 = vand.u32 2147483647, %v414_v24  ;;  %v439_v29 = vpop.permute.xlu1 %438  ;;  %v393_v30 = vpop.permute.xlu0 %392 }
  0xc8   : > { %v1791_v31 = vadd.f32 %v467_v25, %v421_v27  ;;  %v461_v32 = vsub.f32 %v439_v29, %v452_v14  ;;  %v462_v33 = vsub.f32 %v439_v29, %v456_v15  ;;  %v415_v34 = vsub.f32 %v393_v30, %v406_v16 }
  0xc9   : > { %v1793_v35 = vadd.f32 %v468_v26, %v422_v28  ;;  %v416_v36 = vsub.f32 %v393_v30, %v410_v17 }
  0xca   : > { %v491_v37 = vadd.f32 1e-06, %v1791_v31  ;;  %v469_v38 = vand.u32 2147483647, %v461_v32  ;;  %v470_v39 = vand.u32 2147483647, %v462_v33  ;;  %v483_v32 = vmul.f32 %v1791_v31, %v1791_v31 }
  0xcb   : > { %v492_v40 = vadd.f32 1e-06, %v1793_v35  ;;  %v423_v41 = vand.u32 2147483647, %v415_v34  ;;  %v424_v42 = vand.u32 2147483647, %v416_v36  ;;  %v443_v43 = vpop.permute.xlu1 %442  ;;  %v397_v44 = vpop.permute.xlu0 %396 }
  0xcc   : > { %v463_v45 = vsub.f32 %v443_v43, %v452_v14  ;;  %v464_v46 = vsub.f32 %v443_v43, %v456_v15  ;;  %v417_v47 = vsub.f32 %v397_v44, %v406_v16  ;;  %v418_v50 = vsub.f32 %v397_v44, %v410_v17 }
  0xcd   : > { %v477_v48 = vadd.f32 %v469_v38, %v423_v41  ;;  %v478_v49 = vadd.f32 %v470_v39, %v424_v42  ;;  %1393 = vlog2.f32 %v491_v37  ;;  %v484_v37 = vmul.f32 %v1793_v35, %v1793_v35 }
  0xce   : > { %v471_v51 = vand.u32 2147483647, %v463_v45  ;;  %v472_v52 = vand.u32 2147483647, %v464_v46  ;;  %v425_v53 = vand.u32 2147483647, %v417_v47  ;;  %1395 = vlog2.f32 %v492_v40 }
  0xcf   : > { %v493_v54 = vadd.f32 1e-06, %v477_v48  ;;  %v494_v55 = vadd.f32 1e-06, %v478_v49  ;;  %v426_v56 = vand.u32 2147483647, %v418_v50  ;;  %v447_v57 = vpop.permute.xlu1 %446  ;;  %v401_v58 = vpop.permute.xlu0 %400  ;;  %v485_v24 = vmul.f32 %v477_v48, %v477_v48 }
  0xd0   : > { %v479_v59 = vadd.f32 %v471_v51, %v425_v53  ;;  %v465_v60 = vsub.f32 %v447_v57, %v452_v14  ;;  %v466_v61 = vsub.f32 %v447_v57, %v456_v15  ;;  %v419_v62 = vsub.f32 %v401_v58, %v406_v16 }
  0xd1   : > { %1397 = vlog2.f32 %v493_v54  ;;  %v480_v63 = vadd.f32 %v472_v52, %v426_v56  ;;  %v420_v0 = vsub.f32 %v401_v58, %v410_v17  ;;  %v486_v29 = vmul.f32 %v478_v49, %v478_v49 }
  0xd2   : > { %1399 = vlog2.f32 %v494_v55  ;;  %v495_v1 = vadd.f32 1e-06, %v479_v59  ;;  %v473_v2 = vand.u32 2147483647, %v465_v60  ;;  %v474_v4 = vand.u32 2147483647, %v466_v61 }
  0xd3   : > { %v496_v6 = vadd.f32 1e-06, %v480_v63  ;;  %v427_v7 = vand.u32 2147483647, %v419_v62  ;;  %v428_v8 = vand.u32 2147483647, %v420_v0  ;;  %v529_v28 = vpop.permute.xlu0 %528  ;;  %v487_v34 = vmul.f32 %v479_v59, %v479_v59  ;;  %v533_v39 = vpop.permute.xlu1 %532 }
  0xd4   : > { %1401 = vlog2.f32 %v495_v1  ;;  %v488_v40 = vmul.f32 %v480_v63, %v480_v63 }
  0xd5   : > { %1403 = vlog2.f32 %v496_v6  ;;  %v481_v10 = vadd.f32 %v473_v2, %v427_v7  ;;  %v482_v19 = vadd.f32 %v474_v4, %v428_v8 }
  0xd7   : > { %v497_v20 = vadd.f32 1e-06, %v481_v10  ;;  %v498_v21 = vadd.f32 1e-06, %v482_v19  ;;  %v1394_v22 = vpop.eup %1393  ;;  %v537_v46 = vpop.permute.xlu0 %536  ;;  %v489_v50 = vmul.f32 %v481_v10, %v481_v10  ;;  %v490_v35 = vmul.f32 %v482_v19, %v482_v19 }
  0xd8   : > { %v1396_v14 = vpop.eup %1395  ;;  %v500_v23 = vmul.f32 0.6931472, %v1394_v22  ;;  %v541_v55 = vpop.permute.xlu1 %540 }
  0xd9   : > { %1405 = vlog2.f32 %v497_v20  ;;  %v502_v27 = vmul.f32 0.6931472, %v1396_v14  ;;  %v1547_v20 = vmov 1966171168   ;;  %v368_v14 = vstv %s357_s16  ;;  %s1548_s16 = smov [#allocation7]  }
  0xda   : > { %1407 = vlog2.f32 %v498_v21  ;;  %v515_v42 = vmul.f32 %v500_v23, %v483_v32  ;;  %v575_v21 = vunpack.c.l.s4 %v1547_v20 }
  0xdb   : > { %v1398_v15 = vpop.eup %1397  ;;  %v516_v44 = vmul.f32 %v502_v27, %v484_v37  ;;  %v378_v37 = vstv %s365_s7 }
  0xdc   : > { %v1400_v16 = vpop.eup %1399  ;;  %v504_v17 = vmul.f32 0.6931472, %v1398_v15  ;;  %v542_v52 = vmul.f32 %v529_v28, %v515_v42  ;;  %v366_v15 = vstv %s355_s30  ;;  %s1458_s30 = sshll.u32 %s1548_s16, 4  ;;  %s1459_s30 = int_to_ptr.vmem [resolvable:$false] %s1458_s30 }
  0xdd   : > { %v506_v25 = vmul.f32 0.6931472, %v1400_v16  ;;  %v543_v56 = vmul.f32 %v529_v28, %v516_v44  ;;  %s1460_s27 = scalar_lea.vmem %s1459_s30, 256 }
  0xde   : > { %v1402_v26 = vpop.eup %1401  ;;  %v517_v33 = vmul.f32 %v504_v17, %v485_v24  ;;  %v369_v24 = vmul.f32 %v368_v14, %v1759_v3 }
  0xdf   : > { %v1404_v30 = vpop.eup %1403  ;;  %v508_v36 = vmul.f32 0.6931472, %v1402_v26  ;;  %v518_v38 = vmul.f32 %v506_v25, %v486_v29  ;;  %v367_v25 = vmul.f32 %v366_v15, %v1768_v5  ;;  %v576_v26 = vunpack.c.0.s8 %v575_v21 }
  0xe0   : > { %v510_v41 = vmul.f32 0.6931472, %v1404_v30  ;;  %v544_v48 = vmul.f32 %v533_v39, %v517_v33 }
  0xe1   : > { %v519_v43 = vmul.f32 %v508_v36, %v487_v34  ;;  %v545_v31 = vmul.f32 %v533_v39, %v518_v38  ;;  %v370_v32 = vadd.f32 %v369_v24, %v367_v25  ;;  %v579_v33 = vsub.s32 %v576_v26, %v1773_v11 }
  0xe2   : > { %v520_v45 = vmul.f32 %v510_v41, %v488_v40  ;;  %v550_v59 = vadd.f32 %v544_v48, %v542_v52  ;;  %v371_v36 = vstv %s359_s12  ;;  %v379_v40 = vadd.f32 %v378_v37, %v1771_v9 }
  0xe3   : > { %v1406_v47 = vpop.eup %1405  ;;  %v546_v53 = vmul.f32 %v537_v46, %v519_v43  ;;  %v561_v61 = vadd.f32 %v545_v31, %v543_v56  ;;  %v372_v39 = vadd.f32 %v371_v36, %v370_v32 }
  0xe4   : > { %v1408_v49 = vpop.eup %1407  ;;  %v512_v51 = vmul.f32 0.6931472, %v1406_v47  ;;  %v547_v57 = vmul.f32 %v537_v46, %v520_v45 }
  0xe5   : > { %v514_v54 = vmul.f32 0.6931472, %v1408_v49  ;;  %v551_v63 = vadd.f32 %v550_v59, %v546_v53 }
  0xe6   : > { %v521_v58 = vmul.f32 %v512_v51, %v489_v50  ;;  %v562_v1 = vadd.f32 %v561_v61, %v547_v57 }
  0xe7   : > { %v522_v60 = vmul.f32 %v514_v54, %v490_v35 }
  0xe8   : > { %v548_v62 = vmul.f32 %v541_v55, %v521_v58 }
  0xe9   : > { %v549_v0 = vmul.f32 %v541_v55, %v522_v60 }
  0xea   : > { %v553_v2 = vsel %vm552_vm0, %v548_v62, 0.0 }
  0xeb   : > { %v554_v4 = vadd.f32 %v553_v2, %v551_v63  ;;  %v563_v6 = vsel %vm552_vm0, %v549_v0, 0.0 }
  0xec   : > { %v564_v7 = vadd.f32 %v563_v6, %v562_v1 }
  0xed   : > { %v555_v8 = vrot.slane %v554_v4, 4 }
  0xee   : > { %v565_v10 = vrot.slane %v564_v7, 4 }
  0xef   : > { %v556_v19 = vadd.f32 %v555_v8, %v554_v4 }
  0xf0   : > { %v566_v22 = vadd.f32 %v565_v10, %v564_v7 }
  0xf1   : > { %v557_v16 = vrot.slane %v556_v19, 2 }
  0xf2   : > { %v567_v17 = vrot.slane %v566_v22, 2 }
  0xf3   : > { %v558_v23 = vadd.f32 %v557_v16, %v556_v19 }
  0xf4   : > { %v568_v27 = vadd.f32 %v567_v17, %v566_v22 }
  0xf5   : > { %v559_v28 = vrot.slane %v558_v23, 1 }
  0xf6   : > { %v569_v29 = vrot.slane %v568_v27, 1 }
  0xf7   : > { %v560_v30 = vadd.f32 %v559_v28, %v558_v23 }
  0xf8   : > { %v570_v34 = vadd.f32 %v569_v29, %v568_v27 }
  0xfa   : > { %v573_v38 = vcombine.low %v560_v30, %v570_v34 }
  0xfc   : > { %v580_v41 = vrot.slane %v573_v38, %v579_v33 }
  0xfe   : > { %v587_v42 = vrot.slane %v580_v41, %v579_v33 }
 0x100   : > { %v589_v3 = vadd.f32 %v587_v42, %v372_v39  ;;  %v590_v43 = vadd.f32 %v587_v42, %v379_v40 }
 0x102   : > { %v591_v5 = vadd.f32 1.0, %v589_v3  ;;  %v594_v44 = vadd.f32 1.0, %v590_v43 }
 0x104   : > { %v592_v45 = vmul.f32 0.5, %v591_v5  ;;  %v595_v46 = vmul.f32 0.5, %v594_v44 }
 0x106   : > { %v593_v47 = vmul.f32 15.0, %v592_v45  ;;  %v596_v48 = vmul.f32 15.0, %v595_v46 }
 0x108   : > { %v597_v49 = vand.u32 2147483647, %v593_v47  ;;  %v638_v31 = vand.u32 2147483647, %v596_v48 }
 0x10a   : > { %v600_v50 = vmul.f32 0.06666667, %v597_v49  ;;  %v641_v51 = vmul.f32 0.06666667, %v638_v31  ;;  %v607_v62 = vand.u32 2147483648, %v597_v49  ;;  %v648_v6 = vand.u32 2147483648, %v638_v31 }
 0x10c   : > { %v601_v52 = vfloor.f32 %v600_v50  ;;  %v642_v53 = vfloor.f32 %v641_v51  ;;  %v1814_v51 = vadd.s32 8, %v1773_v11 }
 0x10e   : > { %v602_v35 = vmul.f32 15.0, %v601_v52  ;;  %v617_v54 = vand.u32 2147483647, %v601_v52  ;;  %v643_v55 = vmul.f32 15.0, %v642_v53  ;;  %v657_v9 = vand.u32 2147483647, %v642_v53 }
 0x10f   : > { %v626_v14 = vand.u32 2147483648, %v601_v52  ;;  %v666_v23 = vand.u32 2147483648, %v642_v53 }
 0x110   : > { %v603_v56 = vsub.f32 %v597_v49, %v602_v35  ;;  %v619_v57 = vmul.f32 0.5, %v617_v54  ;;  %v644_v58 = vsub.f32 %v638_v31, %v643_v55  ;;  %v659_v59 = vmul.f32 0.5, %v657_v9 }
 0x112   : > { %vm604_vm1 = vcmp.eq.f32.partialorder %v603_v56, 15.0  ;;  %v620_v60 = vfloor.f32 %v619_v57  ;;  %vm645_vm2 = vcmp.eq.f32.partialorder %v644_v58, 15.0  ;;  %v660_v0 = vfloor.f32 %v659_v59 }
 0x113   : > { %v605_v61 = vsel %vm604_vm1, 0.0, %v603_v56  ;;  %v646_v63 = vsel %vm645_vm2, 0.0, %v644_v58 }
 0x114   : > { %v606_v1 = vand.u32 2147483647, %v605_v61  ;;  %v621_v2 = vmul.f32 2.0, %v620_v60  ;;  %v647_v4 = vand.u32 2147483647, %v646_v63  ;;  %v661_v7 = vmul.f32 2.0, %v660_v0 }
 0x116   : > { %v608_v8 = vor.u32 %v607_v62, %v606_v1  ;;  %v622_v10 = vsub.f32 %v617_v54, %v621_v2  ;;  %v649_v19 = vor.u32 %v648_v6, %v647_v4  ;;  %v662_v20 = vsub.f32 %v657_v9, %v661_v7 }
 0x118   : > { %vm623_vm3 = vcmp.eq.f32.partialorder %v622_v10, 2.0  ;;  %vm609_vm4 = vcmp.ne.f32.partialorder %v608_v8, 0.0  ;;  %vm610_vm5 = vcmp.lt.f32.partialorder %v608_v8, 0.0  ;;  %v612_v21 = vadd.f32 15.0, %v608_v8 }
 0x119   : > { %vm611_vm6 = vmand %vm610_vm5, %vm609_vm4  ;;  %v624_v22 = vsel %vm623_vm3, 0.0, %v622_v10  ;;  %vm650_vm7 = vcmp.ne.f32.partialorder %v649_v19, 0.0  ;;  %vm651_vm8 = vcmp.lt.f32.partialorder %v649_v19, 0.0  ;;  %vm663_vm9 = vcmp.eq.f32.partialorder %v662_v20, 2.0 }
 0x11a   : > { %v625_v15 = vand.u32 2147483647, %v624_v22  ;;  %v653_v16 = vadd.f32 15.0, %v649_v19  ;;  %v664_v17 = vsel %vm663_vm9, 0.0, %v662_v20  ;;  %v613_v24 = vsel %vm611_vm6, %v612_v21, %v608_v8  ;;  %vm652_vm10 = vmand %vm651_vm8, %vm650_vm7 }
 0x11b   : > { %v665_v26 = vand.u32 2147483647, %v664_v17  ;;  %v634_v29 = vsub.f32 15.0, %v613_v24 }
 0x11c   : > { %v627_v25 = vor.u32 %v626_v14, %v625_v15  ;;  %v654_v30 = vsel %vm652_vm10, %v653_v16, %v649_v19 }
 0x11d   : > { %v667_v28 = vor.u32 %v666_v23, %v665_v26  ;;  %v674_v37 = vsub.f32 15.0, %v654_v30 }
 0x11e   : > { %vm628_vm11 = vcmp.ne.f32.partialorder %v627_v25, 0.0  ;;  %vm629_vm12 = vcmp.lt.f32.partialorder %v627_v25, 0.0  ;;  %v631_v27 = vadd.f32 2.0, %v627_v25 }
 0x11f   : > { %vm630_vm13 = vmand %vm629_vm12, %vm628_vm11  ;;  %vm668_vm14 = vcmp.ne.f32.partialorder %v667_v28, 0.0  ;;  %vm669_vm15 = vcmp.lt.f32.partialorder %v667_v28, 0.0  ;;  %v671_v33 = vadd.f32 2.0, %v667_v28 }
 0x120   : > { %v632_v32 = vsel %vm630_vm13, %v631_v27, %v627_v25  ;;  %vm670_vm2 = vmand %vm669_vm15, %vm668_vm14 }
 0x121   : > { %vm633_vm1 = vcmp.eq.f32.partialorder %v632_v32, 0.0  ;;  %v672_v36 = vsel %vm670_vm2, %v671_v33, %v667_v28  ;;  %v1390_v32 = vld [vmem:[%s1733_s13 + $0x8] sm:$0xff]  }
 0x122   : > { %v635_v34 = vsel %vm633_vm1, %v613_v24, %v634_v29  ;;  %vm673_vm3 = vcmp.eq.f32.partialorder %v672_v36, 0.0 }
 0x123   : > { %v636_v38 = vmax.f32 %v635_v34, 0.0  ;;  %v675_v39 = vsel %vm673_vm3, %v654_v30, %v674_v37  ;;  %v1389_v30 = vld [vmem:[%s1733_s13] sm:$0xff]  }
 0x124   : > { %v676_v41 = vmax.f32 %v675_v39, 0.0 }
 0x125   : > { %v637_v40 = vmin.f32 %v636_v38, 15.0 }
 0x126   : > { %v677_v3 = vmin.f32 %v676_v41, 15.0  ;;  %v1392_v41 = vld [vmem:[%s1733_s13 + $0x18] sm:$0xff]  }
 0x127   : > { %v678_v42 = vfloor.f32 %v637_v40 }
 0x128   : > { %v679_v5 = vfloor.f32 %v677_v3 }
 0x129   : > { %v1308_v43 = vtrunc.f32 %v678_v42  ;;  %v680_v44 = vsub.f32 %v637_v40, %v678_v42 }
 0x12a   : > { %v1811_v46 = vsub.f32 %v677_v3, %v679_v5  ;;  %v1310_v47 = vtrunc.f32 %v679_v5 }
 0x12b   : > { %v1309_v45 = vcvt.f32.s32 %v1308_v43  ;;  %v717_v31 = vsub.f32 1.0, %v680_v44  ;;  %v753_v9 = vrot.slane %v680_v44, %v1779_v13  ;;  %v749_v57 = vrot.slane %v680_v44, %v1776_v12 }
 0x12c   : > { %v1311_v49 = vcvt.f32.s32 %v1310_v47  ;;  %v776_v52 = vsub.f32 1.0, %v1811_v46  ;;  %v808_v36 = vrot.slane %v1811_v46, %v1776_v12  ;;  %v812_v37 = vrot.slane %v1811_v46, %v1779_v13 }
 0x12d   : > { %vm683_vm4 = vcmp.gt.s32.totalorder %v1309_v45, 0  ;;  %v726_v56 = vrot.slane %v717_v31, %v1779_v13  ;;  %v722_v59 = vrot.slane %v717_v31, %v1776_v12 }
 0x12e   : > { %v684_v48 = vsel %vm683_vm4, %v1309_v45, 0  ;;  %vm688_vm6 = vcmp.gt.s32.totalorder %v1311_v49, 0  ;;  %v1828_v61 = vrot.slane %v776_v52, %v1776_v12  ;;  %v785_v24 = vrot.slane %v776_v52, %v1779_v13 }
 0x12f   : > { %vm685_vm5 = vcmp.lt.s32.totalorder %v684_v48, 15  ;;  %v689_v55 = vsel %vm688_vm6, %v1311_v49, 0 }
 0x130   : > { %v686_v50 = vsel %vm685_vm5, %v684_v48, 15  ;;  %vm690_vm7 = vcmp.lt.s32.totalorder %v689_v55, 15 }
 0x131   : > { %v692_v53 = vadd.s32 1, %v686_v50  ;;  %v712_v35 = vrot.slane %v686_v50, %v1779_v13  ;;  %v708_v54 = vrot.slane %v686_v50, %v1776_v12  ;;  %v691_v60 = vsel %vm690_vm7, %v689_v55, 15 }
 0x132   : > { %v697_v0 = vadd.s32 1, %v691_v60  ;;  %v1831_v1 = vrot.slane %v691_v60, %v1776_v12  ;;  %v771_v10 = vrot.slane %v691_v60, %v1779_v13  ;;  %vm832_vm7 = vcmask 130048  }
 0x133   : > { %vm693_vm8 = vcmp.gt.s32.totalorder %v692_v53, 0  ;;  %vm714_vm9 = vcmp.eq.s32.totalorder %v1773_v11, %v712_v35  ;;  %vm716_vm10 = vcmp.eq.s32.totalorder %v1814_v51, %v712_v35  ;;  %vm713_vm11 = vcmp.eq.s32.totalorder %v1773_v11, %v708_v54 }
 0x134   : > { %v694_v58 = vsel %vm693_vm8, %v692_v53, 0  ;;  %vm715_vm13 = vcmp.eq.s32.totalorder %v1814_v51, %v708_v54  ;;  %v730_v63 = vsel %vm714_vm9, %v726_v56, 0.0  ;;  %v732_v2 = vsel %vm716_vm10, %v726_v56, 0.0 }
 0x135   : > { %vm695_vm12 = vcmp.lt.s32.totalorder %v694_v58, 15  ;;  %v729_v6 = vsel %vm713_vm11, %v722_v59, 0.0  ;;  %v731_v8 = vsel %vm715_vm13, %v722_v59, 0.0  ;;  %vm698_vm14 = vcmp.gt.s32.totalorder %v697_v0, 0 }
 0x136   : > { %v696_v62 = vsel %vm695_vm12, %v694_v58, 15  ;;  %vm774_vm15 = vcmp.eq.s32.totalorder %v1814_v51, %v1831_v1  ;;  %v699_v23 = vsel %vm698_vm14, %v697_v0, 0  ;;  %vm775_vm6 = vcmp.eq.s32.totalorder %v1814_v51, %v771_v10 }
 0x137   : > { %v740_v4 = vrot.slane %v696_v62, %v1779_v13  ;;  %v736_v7 = vrot.slane %v696_v62, %v1776_v12  ;;  %v790_v25 = vsel %vm774_vm15, %v1828_v61, 0.0  ;;  %vm700_vm5 = vcmp.lt.s32.totalorder %v699_v23, 15 }
 0x138   : > { %v701_v28 = vsel %vm700_vm5, %v699_v23, 15  ;;  %v791_v29 = vsel %vm775_vm6, %v785_v24, 0.0  ;;  %vm772_vm12 = vcmp.eq.s32.totalorder %v1773_v11, %v1831_v1  ;;  %vm773_vm13 = vcmp.eq.s32.totalorder %v1773_v11, %v771_v10 }
 0x139   : > { %vm742_vm1 = vcmp.eq.s32.totalorder %v1773_v11, %v740_v4  ;;  %vm744_vm2 = vcmp.eq.s32.totalorder %v1814_v51, %v740_v4  ;;  %vm741_vm3 = vcmp.eq.s32.totalorder %v1773_v11, %v736_v7  ;;  %vm743_vm4 = vcmp.eq.s32.totalorder %v1814_v51, %v736_v7 }
 0x13a   : > { %v757_v19 = vsel %vm742_vm1, %v753_v9, 0.0  ;;  %v759_v20 = vsel %vm744_vm2, %v753_v9, 0.0  ;;  %v756_v21 = vsel %vm741_vm3, %v749_v57, 0.0  ;;  %v758_v22 = vsel %vm743_vm4, %v749_v57, 0.0 }
 0x13b   : > { %v761_v14 = vadd.f32 %v757_v19, %v730_v63  ;;  %v763_v15 = vadd.f32 %v759_v20, %v732_v2  ;;  %v760_v16 = vadd.f32 %v756_v21, %v729_v6  ;;  %v762_v17 = vadd.f32 %v758_v22, %v731_v8 }
 0x13c   : > { %v795_v33 = vrot.slane %v701_v28, %v1776_v12  ;;  %v799_v34 = vrot.slane %v701_v28, %v1779_v13  ;;  %v1391_v13 = vld [vmem:[%s1733_s13 + $0x10] sm:$0xff]   ;;  %v788_v43 = vsel %vm772_vm12, %v1828_v61, 0.0  ;;  %v789_v5 = vsel %vm773_vm13, %v785_v24, 0.0  ;;  %s1282_s13 = sshll.u32 %s1729_s29, 3 }
 0x13d   : > { %v824_v26 = vpack.c.bf16 %v763_v15, %v761_v14  ;;  %v823_v27 = vpack.c.bf16 %v762_v17, %v760_v16  ;;  %vm1115_vm14 = vcmask 1041408   ;;  %vm1118_vm15 = vcmask 1042432   ;;  %s336_s28 = scalar_lea.vmem [#allocation7], %s1282_s13 }
 0x13e   : > { %vm802_vm8 = vcmp.eq.s32.totalorder %v1814_v51, %v795_v33  ;;  %vm803_vm9 = vcmp.eq.s32.totalorder %v1814_v51, %v799_v34  ;;  %vm800_vm10 = vcmp.eq.s32.totalorder %v1773_v11, %v795_v33  ;;  %vm801_vm11 = vcmp.eq.s32.totalorder %v1773_v11, %v799_v34  ;;  %s1143_s20 = sshll.u32 %s336_s28, 4  ;;  %s1884_s20 = int_to_ptr.vmem [resolvable:$true] %s1143_s20 }
 0x13f   : > { %836 = vmatprep.subr.bf16.mxu0 %v824_v26  ;;  %908 = vmatprep.subr.bf16.mxu1 %v824_v26  ;;  %v817_v38 = vsel %vm802_vm8, %v808_v36, 0.0  ;;  %v818_v40 = vsel %vm803_vm9, %v812_v37, 0.0  ;;  %v815_v42 = vsel %vm800_vm10, %v808_v36, 0.0  ;;  %v816_v3 = vsel %vm801_vm11, %v812_v37, 0.0  ;;  %s1454_s24 = scalar_lea.vmem %s1884_s20, 128  ;;  %p1461_p1 = scmp.lt.s32.totalorder %s1884_s20, %s1459_s30 }
 0x140   : > { %837 = vmatpush1.bf16.msra.mxu0 %v823_v27  ;;  %909 = vmatpush1.bf16.msra.mxu1 %v823_v27  ;;  %v821_v39 = vadd.f32 %v817_v38, %v790_v25  ;;  %v1857_v12 = vadd.f32 %v818_v40, %v791_v29  ;;  %v820_v46 = vadd.f32 %v816_v3, %v789_v5  ;;  %p1455_p2 = scmp.ne.s32.totalorder %s1884_s20, %s1454_s24  ;;  %p1462_p9 = scmp.lt.s32.totalorder %s1460_s27, %s1454_s24 }
 0x141   : > { %980 = vmatprep.subr.bf16.mxu0 %v824_v26  ;;  %1052 = vmatprep.subr.bf16.mxu1 %v824_v26 }
 0x142   : > { %p1456_p6 = pnand %p1455_p2, %p1956_p13  ;;  %p1463_p8 = por %p1462_p9, %p1461_p1 }
 0x143   : > { %1288 = vmatmul.mubr.msk.bf16.vlgmr.msra.gmra.mrb[0].mxu0 %vm832_vm7, %v1389_v30  ;;  %1292 = vmatmul.mubr.msk.bf16.vlgmr.msra.gmra.mrb[0].mxu1 %vm832_vm7, %v1390_v32 }
 0x144   : > { %981 = vmatpush1.bf16.msra.mxu0 %v823_v27  ;;  %1053 = vmatpush1.bf16.msra.mxu1 %v823_v27  ;;  %p1457_p0 = pneg %p1456_p6 }
 0x145   : > { %1012 = vmatprep.mubr.bf16.mxu0 %v1546_v18  ;;  %1084 = vmatprep.mubr.bf16.mxu1 %v1546_v18  ;;  %v819_v18 = vadd.f32 %v815_v42, %v788_v43 }
 0x146   : > { %p1464_p4 = pnand %p1463_p8, %p1457_p0 }
 0x14b   : > { %1296 = vmatmul.mubr.msk.bf16.vlgmr.msra.gmra.mrb[4].mxu0 %vm832_vm7, %v1391_v13  ;;  %1300 = vmatmul.mubr.msk.bf16.vlgmr.msra.gmra.mrb[4].mxu1 %vm832_vm7, %v1392_v41 }
 0x216   : > { %v870_v44 = vpop.f32.mrb[0].mxu0  ;;  %v942_v45 = vpop.f32.mrb[0].mxu1 }
 0x217   : > { %v879_v47 = vmul.f32 %v870_v44, %v819_v18  ;;  %v951_v48 = vmul.f32 %v942_v45, %v819_v18  ;;  %v872_v49 = vpop.f32.mrb[1].mxu0  ;;  %v944_v31 = vpop.f32.mrb[1].mxu1 }
 0x218   : > { %v880_v50 = vmul.f32 %v872_v49, %v820_v46  ;;  %v952_v51 = vmul.f32 %v944_v31, %v820_v46  ;;  %v874_v52 = vpop.f32.mrb[2].mxu0  ;;  %v946_v53 = vpop.f32.mrb[2].mxu1 }
 0x219   : > { %v881_v35 = vmul.f32 %v874_v52, %v821_v39  ;;  %v953_v54 = vmul.f32 %v946_v53, %v821_v39  ;;  %v876_v55 = vpop.f32.mrb[3].mxu0  ;;  %v948_v11 = vpop.f32.mrb[3].mxu1 }
 0x21a   : > { %v882_v9 = vmul.f32 %v876_v55, %v1857_v12  ;;  %v954_v56 = vmul.f32 %v948_v11, %v1857_v12 }
 0x21b   : > { %v883_v57 = vadd.f32 %v881_v35, %v879_v47  ;;  %v955_v58 = vadd.f32 %v953_v54, %v951_v48 }
 0x21c   : > { %v890_v59 = vadd.f32 %v882_v9, %v880_v50  ;;  %v962_v60 = vadd.f32 %v954_v56, %v952_v51 }
 0x21d   : > { %v884_v61 = vrot.slane %v883_v57, 4  ;;  %v956_v62 = vrot.slane %v955_v58, 4 }
 0x21e   : > { %v891_v63 = vrot.slane %v890_v59, 4  ;;  %v963_v0 = vrot.slane %v962_v60, 4  ;;  %v1014_v1 = vpop.f32.mrb[4].mxu0  ;;  %v1086_v2 = vpop.f32.mrb[4].mxu1 }
 0x21f   : > { %v885_v4 = vadd.f32 %v884_v61, %v883_v57  ;;  %v957_v6 = vadd.f32 %v956_v62, %v955_v58  ;;  %v1023_v7 = vmul.f32 %v1014_v1, %v819_v18  ;;  %v1095_v8 = vmul.f32 %v1086_v2, %v819_v18  ;;  %v1016_v10 = vpop.f32.mrb[5].mxu0  ;;  %v1088_v19 = vpop.f32.mrb[5].mxu1 }
 0x220   : > { %v892_v20 = vadd.f32 %v891_v63, %v890_v59  ;;  %v964_v21 = vadd.f32 %v963_v0, %v962_v60  ;;  %v1024_v22 = vmul.f32 %v1016_v10, %v820_v46  ;;  %v1096_v14 = vmul.f32 %v1088_v19, %v820_v46  ;;  %v1018_v15 = vpop.f32.mrb[6].mxu0  ;;  %v1090_v16 = vpop.f32.mrb[6].mxu1 }
 0x221   : > { %v886_v17 = vrot.slane %v885_v4, 2  ;;  %v958_v23 = vrot.slane %v957_v6, 2  ;;  %v1025_v24 = vmul.f32 %v1018_v15, %v821_v39  ;;  %v1097_v25 = vmul.f32 %v1090_v16, %v821_v39  ;;  %v1020_v26 = vpop.f32.mrb[7].mxu0  ;;  %v1092_v27 = vpop.f32.mrb[7].mxu1 }
 0x222   : > { %v893_v28 = vrot.slane %v892_v20, 2  ;;  %v965_v29 = vrot.slane %v964_v21, 2  ;;  %v1026_v30 = vmul.f32 %v1020_v26, %v1857_v12  ;;  %v1098_v32 = vmul.f32 %v1092_v27, %v1857_v12 }
 0x223   : > { %v887_v33 = vadd.f32 %v886_v17, %v885_v4  ;;  %v959_v34 = vadd.f32 %v958_v23, %v957_v6  ;;  %v1027_v36 = vadd.f32 %v1025_v24, %v1023_v7  ;;  %v1099_v37 = vadd.f32 %v1097_v25, %v1095_v8 }
 0x224   : > { %v894_v38 = vadd.f32 %v893_v28, %v892_v20  ;;  %v966_v40 = vadd.f32 %v965_v29, %v964_v21  ;;  %v1034_v13 = vadd.f32 %v1026_v30, %v1024_v22  ;;  %v1106_v41 = vadd.f32 %v1098_v32, %v1096_v14 }
 0x225   : > { %v888_v42 = vrot.slane %v887_v33, 1  ;;  %v960_v3 = vrot.slane %v959_v34, 1  ;;  %v1028_v43 = vrot.slane %v1027_v36, 4  ;;  %v1100_v39 = vrot.slane %v1099_v37, 4 }
 0x226   : > { %v895_v18 = vrot.slane %v894_v38, 1  ;;  %v967_v5 = vrot.slane %v966_v40, 1  ;;  %v1035_v44 = vrot.slane %v1034_v13, 4  ;;  %v1107_v45 = vrot.slane %v1106_v41, 4 }
 0x227   : > { %v889_v46 = vadd.f32 %v888_v42, %v887_v33  ;;  %v961_v47 = vadd.f32 %v960_v3, %v959_v34  ;;  %v1029_v12 = vadd.f32 %v1028_v43, %v1027_v36  ;;  %v1101_v48 = vadd.f32 %v1100_v39, %v1099_v37 }
 0x228   : > { %v896_v49 = vadd.f32 %v895_v18, %v894_v38  ;;  %v968_v31 = vadd.f32 %v967_v5, %v966_v40  ;;  %v1036_v50 = vadd.f32 %v1035_v44, %v1034_v13  ;;  %v1108_v51 = vadd.f32 %v1107_v45, %v1106_v41 }
 0x229   : > { %v1030_v52 = vrot.slane %v1029_v12, 2  ;;  %v1102_v53 = vrot.slane %v1101_v48, 2  ;;  %v1113_v35 = vsel %vm552_vm0, %v889_v46, %v961_v47 }
 0x22a   : > { %v1037_v54 = vrot.slane %v1036_v50, 2  ;;  %v1109_v55 = vrot.slane %v1108_v51, 2  ;;  %v1114_v11 = vsel %vm552_vm0, %v896_v49, %v968_v31 }
 0x22b   : > { %v1031_v9 = vadd.f32 %v1030_v52, %v1029_v12  ;;  %v1103_v56 = vadd.f32 %v1102_v53, %v1101_v48 }
 0x22c   : > { %v1038_v57 = vadd.f32 %v1037_v54, %v1036_v50  ;;  %v1110_v58 = vadd.f32 %v1109_v55, %v1108_v51 }
 0x22d   : > { %v1032_v59 = vrot.slane %v1031_v9, 1  ;;  %v1104_v60 = vrot.slane %v1103_v56, 1 }
 0x22e   : > { %v1039_v61 = vrot.slane %v1038_v57, 1  ;;  %v1111_v62 = vrot.slane %v1110_v58, 1 }
 0x22f   : > { %v1033_v63 = vadd.f32 %v1032_v59, %v1031_v9  ;;  %v1105_v0 = vadd.f32 %v1104_v60, %v1103_v56 }
 0x230   : > { %v1040_v1 = vadd.f32 %v1039_v61, %v1038_v57  ;;  %v1112_v2 = vadd.f32 %v1111_v62, %v1110_v58 }
 0x231   : > { %v1116_v4 = vsel %vm1115_vm14, %v1113_v35, %v1033_v63 }
 0x232   : > { %v1117_v6 = vsel %vm1115_vm14, %v1114_v11, %v1040_v1  ;;  %v1119_v7 = vsel %vm1118_vm15, %v1116_v4, %v1105_v0 }
 0x233   : > { %v1120_v8 = vsel %vm1118_vm15, %v1117_v6, %v1112_v2 }
 0x234   : > { %v1123_v10 = vcombine.low %v1119_v7, %v1120_v8 }
 0x236   : > { %1125 = vst [vmem:[%s336_s28] sm:$0xff] %v1123_v10 }
 0x237   : > { %1467 = shalt.err (!%p1464_p4)
}
 0x238   : > { %s1468_s29 = scalar_lea.hbm %s1882_s14, 128  ;;  %s1472_s12 = scalar_lea.hbm %s1937_s6, 256 }
 0x239   : > { %p1469_p10 = scmp.ne.s32.totalorder %s1882_s14, %s1468_s29  ;;  %p1473_p3 = scmp.lt.u32.totalorder %s1882_s14, %s1937_s6 }
 0x23a   : > { %p1474_p7 = scmp.lt.u32.totalorder %s1472_s12, %s1468_s29  ;;  %p1476_p2 = scmp.lt.u32.totalorder %s1468_s29, %s1882_s14 }
 0x23b   : > { %p1470_p11 = pnand %p1469_p10, %p1956_p13 }
 0x23c   : > { %p1475_p12 = por %p1474_p7, %p1473_p3 }
 0x23d   : > { %p1471_p5 = pneg %p1470_p11 }
 0x23e   : > { %p1477_p6 = por %p1476_p2, %p1475_p12 }
 0x240   : > { %p1478_p0 = pnand %p1477_p6, %p1471_p5 }
 0x242   : > { %1481 = shalt.err (!%p1478_p0)
}
 0x243   : > { %1318 = dma.vmem_to_hbm [thread:$0]  (%p1956_p13), %s1884_s20, 128, %s1882_s14, %s1127_s15  }
 0x244 PF: > { %s1155_s28 = sand.u32 1, %s1520_s21   ;;  %p1957_p1 = scmp.ne.s32.totalorder %s1947_s10, 0 }
 0x245   : > { %p1958_p9 = scmp.ge.s32.totalorder %s1540_s26, 2  ;;  %s1156_s19 = scalar_lea.sflag [#allocation4], %s1155_s28 }
 0x247   : > { %p1329_p8 = pnand %p1958_p9, %p1957_p1 }
 0x249   : > { %1515 = dma.done.wait (!%p1329_p8), %s1156_s19, 128  }
 0x24a   : > { %1517 = vsyncadd (!%p1329_p8), %s1156_s19, 4294967168  ;;  %s23_s26 = sadd.s32 1, %s1540_s26   ;;  %s1959_s21 = smov %s1524_s22 }
 0x24b   : > { %p20_p4 = scmp.ge.s32.totalorder %s23_s26, 4   ;;  %s1960_s22 = smov %s1528_s23 }
 0x24c   : > { %s1961_s23 = smov %s1694_s18  ;;  %s1962_s24 = smov %s1536_s25 }
 0x24d   : > { %s1963_s25 = smov %s1965_s17  ;;  %22 = sbr.rel (!%p20_p4) target bundleno = 9 (0x9), region = 106 }
 0x254   :  { %1161 = vsyncpa [#allocation3], 1 }
 0x255   :  { %1163 = vsyncpa [#allocation3 + $0x1], 1 }
 0x256   :  { %1164 = vsyncpa [#allocation4], 1 }
 0x257   :  { %1166 = vsyncpa [#allocation4 + $0x1], 1 }
 0x258   :  { %1167 = vsyncpa [#allocation5], 1 }
 0x259   :  { %1169 = vsyncpa [#allocation5 + $0x1], 1 }

</bundles_post_ra>
